<compile_context>
chip_gen: v6e
topology: v6e:2x2x1
jax: 0.10.0
libtpu: 0.0.40
codegen_flags: <defaults>
</compile_context>

<pallas_src>
import jax
import jax.numpy as jnp
from jax.experimental import pallas as pl
from jax.experimental.pallas import tpu as pltpu

HIDDEN = 256


def _elu(x):
    # PyTorch ELU default alpha=1.0: x if x > 0 else exp(x) - 1 (overflow-safe form).
    return jnp.where(x > 0, x, jnp.exp(jnp.minimum(x, 0.0)) - 1.0)


def critic_kernel(s_ref, a_ref, w1_ref, b1_ref, w2_ref, b2_ref, w3_ref, b3_ref,
                  o_ref, x_scr):
    sd = s_ref.shape[1]

    # In-kernel lane concat: build the fused (TB, d_in) layer-1 operand once in VMEM
    # (two masked slice-stores; d_in is tiny so this is a single vreg column per 8 rows).
    x_scr[:, :sd] = s_ref[...]
    x_scr[:, sd:] = a_ref[...]
    x = x_scr[...].astype(jnp.bfloat16)          # (TB, d_in) bf16 MXU operand

    # Hoist small resident operands once per tile (JAX does not CSE broadcasts).
    b1 = b1_ref[...]            # (1, H) f32
    b2 = b2_ref[...]            # (1, H) f32
    w3 = w3_ref[...]            # (1, H) f32 -- used on the VPU, never touches the MXU
    b3 = b3_ref[0, 0]           # scalar from SMEM

    # Layer 1: single fused matmul (replaces the split state/action dots).
    h1 = jnp.dot(x, w1_ref[...], preferred_element_type=jnp.float32)
    h1 = _elu(h1 + b1).astype(jnp.bfloat16)      # only bf16 copy stays live

    # Layer 2.
    h2 = jnp.dot(h1, w2_ref[...], preferred_element_type=jnp.float32)
    h2 = _elu(h2 + b2)                           # f32 (TB, H)

    # Layer 3 (H -> 1): VPU multiply + XLU lane-reduce; lane-dense store.
    q = jnp.sum(h2 * w3, axis=1) + b3            # (TB,) f32
    o_ref[...] = q.reshape(1, 1, -1)


def _round_up(x, m):
    return ((x + m - 1) // m) * m


def _choose_block_b(batch, requested=1024):
    """Adaptive batch tile: >=128 (lane-dense store), <=requested, >=2 tiles when B>128."""
    tb = min(requested, _round_up(batch, 128))
    if batch > 128:
        # Ensure at least 2 grid tiles so the ("parallel",) axis shards across v7x's 2 TCs.
        half = _round_up(-(-batch // 2), 128)
        tb = min(tb, max(128, half))
    return max(tb, 128)


def prepare_critic_params(params):
    """One-time weight prep (hoisted off the per-call hot path)."""
    w1, b1, w2, b2, w3, b3 = params
    H = w2.shape[0]
    return (
        w1.astype(jnp.bfloat16),                     # (d_in, H) fused, bf16 MXU operand
        b1.reshape(1, H).astype(jnp.float32),        # (1, H)
        w2.astype(jnp.bfloat16),                     # (H, H) bf16
        b2.reshape(1, H).astype(jnp.float32),        # (1, H)
        w3.reshape(1, H).astype(jnp.float32),        # (1, H) f32 row (VPU-only)
        b3.reshape(1, 1).astype(jnp.float32),        # (1, 1) scalar for SMEM
    )


def critic_forward(state, action, prepared, *, block_b=None):
    """Returns Q-values of shape (batch,), matching torch .view(-1)."""
    w1f, b1, w2b, b2, w3r, b3s = prepared
    B, state_dim = state.shape
    action_dim = action.shape[-1]
    d_in = state_dim + action_dim
    H = w2b.shape[0]
    assert w1f.shape[0] == d_in

    if block_b is None:
        block_b = _choose_block_b(B)
    num_tiles = pl.cdiv(B, block_b)
    padded_b = num_tiles * block_b
    if padded_b != B:
        pad = padded_b - B
        state = jnp.pad(state, ((0, pad), (0, 0)))
        action = jnp.pad(action, ((0, pad), (0, 0)))

    cost = pl.CostEstimate(
        flops=int(2 * padded_b * (d_in * H + H * H + H)),
        transcendentals=int(padded_b * 2 * H),
        bytes_accessed=int(padded_b * (d_in * 4 + 4)
                           + (d_in * H + H * H) * 2 + (3 * H + 1) * 4),
    )

    out = pl.pallas_call(
        critic_kernel,
        grid=(num_tiles,),
        in_specs=[
            pl.BlockSpec((block_b, state_dim), lambda i: (i, 0)),   # state tile
            pl.BlockSpec((block_b, action_dim), lambda i: (i, 0)),  # action tile
            pl.BlockSpec((d_in, H), lambda i: (0, 0)),              # fused W1 (VMEM-resident)
            pl.BlockSpec((1, H), lambda i: (0, 0)),                 # b1
            pl.BlockSpec((H, H), lambda i: (0, 0)),                 # W2
            pl.BlockSpec((1, H), lambda i: (0, 0)),                 # b2
            pl.BlockSpec((1, H), lambda i: (0, 0)),                 # w3 row (f32)
            pl.BlockSpec(memory_space=pltpu.MemorySpace.SMEM),      # b3 scalar
        ],
        out_specs=pl.BlockSpec((1, 1, block_b), lambda i: (i, 0, 0)),
        out_shape=jax.ShapeDtypeStruct((num_tiles, 1, block_b), jnp.float32),
        scratch_shapes=[pltpu.VMEM((block_b, d_in), jnp.float32)],  # concat staging buffer
        compiler_params=pltpu.CompilerParams(
            dimension_semantics=("parallel",)),
        cost_estimate=cost,
    )(state, action, w1f, b1, w2b, b2, w3r, b3s)

    return out.reshape(-1)[:B]


def init_critic_params(key, state_dim, action_dim, hidden=HIDDEN):
    """Deterministic init mimicking nn.Linear default (uniform(-1/sqrt(fan_in), 1/sqrt(fan_in)))."""
    d_in = state_dim + action_dim
    keys = jax.random.split(key, 6)

    def linear(kw, kb, fan_in, fan_out):
        bound = 1.0 / (fan_in ** 0.5)
        # stored as (in, out) so the kernel computes x @ W
        w = jax.random.uniform(kw, (fan_in, fan_out), jnp.float32, -bound, bound)
        b = jax.random.uniform(kb, (1, fan_out), jnp.float32, -bound, bound)
        return w, b

    w1, b1 = linear(keys[0], keys[1], d_in, hidden)
    w2, b2 = linear(keys[2], keys[3], hidden, hidden)
    w3, b3 = linear(keys[4], keys[5], hidden, 1)
    return (w1, b1, w2, b2, w3, b3)


def critic_reference_f32(state, action, params):
    """Pure-f32 reference (matches the PyTorch module exactly)."""
    w1, b1, w2, b2, w3, b3 = params
    x = jnp.concatenate([state, action], axis=-1)
    h1 = _elu(x @ w1 + b1)
    h2 = _elu(h1 @ w2 + b2)
    return (h2 @ w3 + b3).reshape(-1)


def critic_reference_bf16(state, action, params):
    """Mirrors the kernel's mixed precision (bf16 MXU operands, f32 accumulate)."""
    w1, b1, w2, b2, w3, b3 = params
    x = jnp.concatenate([state, action], axis=-1).astype(jnp.bfloat16)
    h1 = _elu(jnp.dot(x, w1.astype(jnp.bfloat16),
                      preferred_element_type=jnp.float32) + b1)
    h2 = _elu(jnp.dot(h1.astype(jnp.bfloat16), w2.astype(jnp.bfloat16),
                      preferred_element_type=jnp.float32) + b2)
    return (h2 @ w3 + b3).reshape(-1)


if __name__ == "__main__":
    # Small shapes consistent with an Ant-like env critic.
    batch, state_dim, action_dim = 8, 24, 8

    key = jax.random.PRNGKey(0)
    k_params, k_state, k_action = jax.random.split(key, 3)

    params = init_critic_params(k_params, state_dim, action_dim)
    prepared = prepare_critic_params(params)            # hoisted, done once
    state = jax.random.normal(k_state, (batch, state_dim), jnp.float32)
    action = jax.random.normal(k_action, (batch, action_dim), jnp.float32)

    q = critic_forward(state, action, prepared)
    q = jax.block_until_ready(q)
    assert q.shape == (batch,), q.shape

    # Tight check against a reference using the same mixed precision as the kernel.
    q_bf16 = critic_reference_bf16(state, action, params)
    assert jnp.allclose(q, q_bf16, atol=1e-4, rtol=1e-4), (q, q_bf16)

    # Loose check against the exact f32 PyTorch-equivalent math (bf16 operand rounding).
    q_f32 = critic_reference_f32(state, action, params)
    assert jnp.allclose(q, q_f32, atol=5e-2, rtol=5e-2), (q, q_f32)

    print("KERNEL_OK")
</pallas_src>

<mosaic_0001>
module attributes {stable_mosaic.version = 11 : i64} {
  func.func @critic_kernel(%arg0: i32, %arg1: memref<128x24xf32, #tpu.memory_space<vmem>>, %arg2: memref<128x8xf32, #tpu.memory_space<vmem>>, %arg3: memref<32x256xbf16, #tpu.memory_space<vmem>>, %arg4: memref<1x256xf32, #tpu.memory_space<vmem>>, %arg5: memref<256x256xbf16, #tpu.memory_space<vmem>>, %arg6: memref<1x256xf32, #tpu.memory_space<vmem>>, %arg7: memref<1x256xf32, #tpu.memory_space<vmem>>, %arg8: memref<1x1xf32, #tpu.memory_space<smem>>, %arg9: memref<1x1x128xf32, #tpu.memory_space<vmem>>, %arg10: memref<128x32xf32, #tpu.memory_space<vmem>>) attributes {dimension_semantics = [#tpu.dimension_semantics<parallel>], iteration_bounds = array<i64: 1>, scalar_prefetch = 0 : i64, scratch_operands = 1 : i64, tpu.core_type = #tpu.core_type<tc>, window_params = [{transform_indices = @transform_0, window_bounds = array<i64: 128, 24>}, {transform_indices = @transform_1, window_bounds = array<i64: 128, 8>}, {pipeline_mode = #tpu.pipeline_mode<synchronous>, transform_indices = @transform_2, window_bounds = array<i64: 32, 256>}, {pipeline_mode = #tpu.pipeline_mode<synchronous>, transform_indices = @transform_3, window_bounds = array<i64: 1, 256>}, {pipeline_mode = #tpu.pipeline_mode<synchronous>, transform_indices = @transform_4, window_bounds = array<i64: 256, 256>}, {pipeline_mode = #tpu.pipeline_mode<synchronous>, transform_indices = @transform_5, window_bounds = array<i64: 1, 256>}, {pipeline_mode = #tpu.pipeline_mode<synchronous>, transform_indices = @transform_6, window_bounds = array<i64: 1, 256>}, {transform_indices = @transform_7, window_bounds = array<i64: 1, 1>}, {transform_indices = @transform_8, window_bounds = array<i64: 1, 1, 128>}]} {
    %c0 = arith.constant 0 : index
    %c0_0 = arith.constant 0 : index
    %0 = vector.load %arg1[%c0, %c0_0] : memref<128x24xf32, #tpu.memory_space<vmem>>, vector<128x24xf32>
    %c0_1 = arith.constant 0 : index
    %c0_2 = arith.constant 0 : index
    %1 = vector.load %arg10[%c0_1, %c0_2] : memref<128x32xf32, #tpu.memory_space<vmem>>, vector<128x24xf32>
    tpu.vector_store %arg10[%c0_1, %c0_2], %0 {strides = array<i32>} : memref<128x32xf32, #tpu.memory_space<vmem>>, vector<128x24xf32>,
    %c0_3 = arith.constant 0 : index
    %c0_4 = arith.constant 0 : index
    %2 = vector.load %arg2[%c0_3, %c0_4] : memref<128x8xf32, #tpu.memory_space<vmem>>, vector<128x8xf32>
    %c0_5 = arith.constant 0 : index
    %c24 = arith.constant 24 : index
    %3 = vector.load %arg10[%c0_5, %c24] : memref<128x32xf32, #tpu.memory_space<vmem>>, vector<128x8xf32>
    tpu.vector_store %arg10[%c0_5, %c24], %2 {strides = array<i32>} : memref<128x32xf32, #tpu.memory_space<vmem>>, vector<128x8xf32>,
    %c0_6 = arith.constant 0 : index
    %c0_7 = arith.constant 0 : index
    %4 = vector.load %arg10[%c0_6, %c0_7] : memref<128x32xf32, #tpu.memory_space<vmem>>, vector<128x32xf32>
    %5 = arith.truncf %4 : vector<128x32xf32> to vector<128x32xbf16>
    %c0_8 = arith.constant 0 : index
    %c0_9 = arith.constant 0 : index
    %6 = vector.load %arg4[%c0_8, %c0_9] : memref<1x256xf32, #tpu.memory_space<vmem>>, vector<1x256xf32>
    %c0_10 = arith.constant 0 : index
    %c0_11 = arith.constant 0 : index
    %7 = vector.load %arg6[%c0_10, %c0_11] : memref<1x256xf32, #tpu.memory_space<vmem>>, vector<1x256xf32>
    %c0_12 = arith.constant 0 : index
    %c0_13 = arith.constant 0 : index
    %8 = vector.load %arg7[%c0_12, %c0_13] : memref<1x256xf32, #tpu.memory_space<vmem>>, vector<1x256xf32>
    %c0_14 = arith.constant 0 : index
    %c0_15 = arith.constant 0 : index
    %9 = memref.load %arg8[%c0_14, %c0_15] : memref<1x1xf32, #tpu.memory_space<smem>>
    %c0_16 = arith.constant 0 : index
    %c0_17 = arith.constant 0 : index
    %10 = vector.load %arg3[%c0_16, %c0_17] : memref<32x256xbf16, #tpu.memory_space<vmem>>, vector<32x256xbf16>
    %cst = arith.constant dense<0.000000e+00> : vector<128x256xf32>
    %11 = tpu.matmul %5, %10, %cst {dimension_numbers = #tpu.dot_dimension_numbers<[1], [0], [0], [1], [0, 0, 1, 1], [], []>} : vector<128x32xbf16>, vector<32x256xbf16>, vector<128x256xf32> -> vector<128x256xf32>
    %12 = vector.broadcast %6 : vector<1x256xf32> to vector<128x256xf32>
    %13 = arith.addf %11, %12 : vector<128x256xf32>
    %cst_18 = arith.constant 0.000000e+00 : f32
    %14 = vector.broadcast %cst_18 : f32 to vector<128x256xf32>
    %15 = arith.cmpf ogt, %13, %14 : vector<128x256xf32>
    %cst_19 = arith.constant 0.000000e+00 : f32
    %16 = vector.broadcast %cst_19 : f32 to vector<128x256xf32>
    %17 = arith.minimumf %13, %16 : vector<128x256xf32>
    %18 = math.exp %17 : vector<128x256xf32>
    %cst_20 = arith.constant 1.000000e+00 : f32
    %19 = vector.broadcast %cst_20 : f32 to vector<128x256xf32>
    %20 = arith.subf %18, %19 : vector<128x256xf32>
    %21 = arith.select %15, %13, %20 : vector<128x256xi1>, vector<128x256xf32>
    %22 = arith.truncf %21 : vector<128x256xf32> to vector<128x256xbf16>
    %c0_21 = arith.constant 0 : index
    %c0_22 = arith.constant 0 : index
    %23 = vector.load %arg5[%c0_21, %c0_22] : memref<256x256xbf16, #tpu.memory_space<vmem>>, vector<256x256xbf16>
    %cst_23 = arith.constant dense<0.000000e+00> : vector<128x256xf32>
    %24 = tpu.matmul %22, %23, %cst_23 {dimension_numbers = #tpu.dot_dimension_numbers<[1], [0], [0], [1], [0, 0, 1, 1], [], []>} : vector<128x256xbf16>, vector<256x256xbf16>, vector<128x256xf32> -> vector<128x256xf32>
    %25 = vector.broadcast %7 : vector<1x256xf32> to vector<128x256xf32>
    %26 = arith.addf %24, %25 : vector<128x256xf32>
    %cst_24 = arith.constant 0.000000e+00 : f32
    %27 = vector.broadcast %cst_24 : f32 to vector<128x256xf32>
    %28 = arith.cmpf ogt, %26, %27 : vector<128x256xf32>
    %cst_25 = arith.constant 0.000000e+00 : f32
    %29 = vector.broadcast %cst_25 : f32 to vector<128x256xf32>
    %30 = arith.minimumf %26, %29 : vector<128x256xf32>
    %31 = math.exp %30 : vector<128x256xf32>
    %cst_26 = arith.constant 1.000000e+00 : f32
    %32 = vector.broadcast %cst_26 : f32 to vector<128x256xf32>
    %33 = arith.subf %31, %32 : vector<128x256xf32>
    %34 = arith.select %28, %26, %33 : vector<128x256xi1>, vector<128x256xf32>
    %35 = vector.broadcast %8 : vector<1x256xf32> to vector<128x256xf32>
    %36 = arith.mulf %34, %35 : vector<128x256xf32>
    %cst_27 = arith.constant dense<0.000000e+00> : vector<128xf32>
    %37 = vector.multi_reduction <add>, %36, %cst_27 [1] : vector<128x256xf32> to vector<128xf32>
    %38 = vector.broadcast %9 : f32 to vector<128xf32>
    %39 = arith.addf %37, %38 : vector<128xf32>
    %40 = vector.shape_cast %39 : vector<128xf32> to vector<1x1x128xf32>
    %c0_28 = arith.constant 0 : index
    %c0_29 = arith.constant 0 : index
    %c0_30 = arith.constant 0 : index
    %41 = vector.load %arg9[%c0_28, %c0_29, %c0_30] : memref<1x1x128xf32, #tpu.memory_space<vmem>>, vector<1x1x128xf32>
    tpu.vector_store %arg9[%c0_28, %c0_29, %c0_30], %40 {strides = array<i32>} : memref<1x1x128xf32, #tpu.memory_space<vmem>>, vector<1x1x128xf32>,
    return
  }
  func.func @transform_0(%arg0: i32) -> (i32, i32) {
    %c0_i32 = arith.constant 0 : i32
    %c0_i32_0 = arith.constant 0 : i32
    return %arg0, %c0_i32 : i32, i32
  }
  func.func @transform_1(%arg0: i32) -> (i32, i32) {
    %c0_i32 = arith.constant 0 : i32
    %c0_i32_0 = arith.constant 0 : i32
    return %arg0, %c0_i32 : i32, i32
  }
  func.func @transform_2(%arg0: i32) -> (i32, i32) {
    %c0_i32 = arith.constant 0 : i32
    %c0_i32_0 = arith.constant 0 : i32
    %c0_i32_1 = arith.constant 0 : i32
    return %c0_i32, %c0_i32_0 : i32, i32
  }
  func.func @transform_3(%arg0: i32) -> (i32, i32) {
    %c0_i32 = arith.constant 0 : i32
    %c0_i32_0 = arith.constant 0 : i32
    %c0_i32_1 = arith.constant 0 : i32
    return %c0_i32, %c0_i32_0 : i32, i32
  }
  func.func @transform_4(%arg0: i32) -> (i32, i32) {
    %c0_i32 = arith.constant 0 : i32
    %c0_i32_0 = arith.constant 0 : i32
    %c0_i32_1 = arith.constant 0 : i32
    return %c0_i32, %c0_i32_0 : i32, i32
  }
  func.func @transform_5(%arg0: i32) -> (i32, i32) {
    %c0_i32 = arith.constant 0 : i32
    %c0_i32_0 = arith.constant 0 : i32
    %c0_i32_1 = arith.constant 0 : i32
    return %c0_i32, %c0_i32_0 : i32, i32
  }
  func.func @transform_6(%arg0: i32) -> (i32, i32) {
    %c0_i32 = arith.constant 0 : i32
    %c0_i32_0 = arith.constant 0 : i32
    %c0_i32_1 = arith.constant 0 : i32
    return %c0_i32, %c0_i32_0 : i32, i32
  }
  func.func @transform_7(%arg0: i32) -> (i32, i32) {
    %c0_i32 = arith.constant 0 : i32
    %c0_i32_0 = arith.constant 0 : i32
    %c0_i32_1 = arith.constant 0 : i32
    return %c0_i32, %c0_i32_0 : i32, i32
  }
  func.func @transform_8(%arg0: i32) -> (i32, i32, i32) {
    %c0_i32 = arith.constant 0 : i32
    %c0_i32_0 = arith.constant 0 : i32
    %c0_i32_1 = arith.constant 0 : i32
    return %arg0, %c0_i32, %c0_i32_0 : i32, i32, i32
  }
}

</mosaic_0001>

<bundles_post_ra>
// kernel: tpu_custom_call.1
= control target key start
LH: loop header
LB: loop body
LE: loop exit
PB: predicated region body
PF: predicated region fallthrough
CT: control target
= control target key end

     0   :  { %s1676_s9 = smov 24   ;;  %v1677_v4 = vmov 0   ;;  %vm48_vm0 = vcmask 195584   ;;  %s2607_s0 = inlined_call_operand.vmem [shape: f32[128,24], index: 0, kind: input, shape index: {}]   ;;  %s2608_s1 = inlined_call_operand.vmem [shape: f32[128,8], index: 1, kind: input, shape index: {}]   ;;  %s2609_s2 = inlined_call_operand.vmem [shape: bf16[32,256], index: 2, kind: input, shape index: {}]   ;;  %s2610_s3 = inlined_call_operand.vmem [shape: f32[1,256], index: 3, kind: input, shape index: {}]   ;;  %s2611_s4 = inlined_call_operand.vmem [shape: bf16[256,256], index: 4, kind: input, shape index: {}]   ;;  %s2612_s5 = inlined_call_operand.vmem [shape: f32[1,256], index: 5, kind: input, shape index: {}]   ;;  %s2613_s6 = inlined_call_operand.vmem [shape: f32[1,256], index: 6, kind: input, shape index: {}]   ;;  %s2614_s7 = inlined_call_operand.<no memory space> [shape: f32[1,1], index: 7, kind: input, shape index: {}]   ;;  %s2615_s8 = inlined_call_operand.hbm [shape: f32[1,1,128], index: 8, kind: output, shape index: {}]  }
   0x1   :  { %v65_v0 = vld [vmem:[%s2608_s1] sm:$0xff]  ;;  %v67_v1 = vld [vmem:[%s2608_s1 + $0x10] sm:$0xff]  ;;  %v66_v2 = vld [vmem:[%s2608_s1 + $0x8] sm:$0xff]  ;;  %282 = vmatprep.mubr.bf16.mxu0 %v1677_v4 }
   0x2   :  { %97 = vrot.lane.b32.xlu0 %v65_v0, %s1676_s9  ;;  %101 = vrot.lane.b32.xlu1 %v67_v1, %s1676_s9  ;;  %v68_v3 = vld [vmem:[%s2608_s1 + $0x18] sm:$0xff]  ;;  %v70_v5 = vld [vmem:[%s2608_s1 + $0x28] sm:$0xff] }
   0x3   :  { %v69_v6 = vld [vmem:[%s2608_s1 + $0x20] sm:$0xff]  ;;  %v34_v8 = vld [vmem:[%s2607_s0 + $0x10] sm:$0xff]  ;;  %v33_v9 = vld [vmem:[%s2607_s0 + $0x8] sm:$0xff] }
   0x4   :  { %v32_v7 = vld [vmem:[%s2607_s0] sm:$0xff]  ;;  %51 = vst.msk [vmem:[#allocation2 + $0x10] sm:$0xff] %vm48_vm0, %v34_v8  ;;  %50 = vst.msk [vmem:[#allocation2 + $0x8] sm:$0xff] %vm48_vm0, %v33_v9  ;;  %v1472_v10 = vld [vmem:[%s2609_s2 + $0x14] ss:$8 sps:$4 sm:$0xff]  }
   0x5   :  { %49 = vst.msk [vmem:[#allocation2] sm:$0xff] %vm48_vm0, %v32_v7  ;;  %v72_v11 = vld [vmem:[%s2608_s1 + $0x38] sm:$0xff]  ;;  %v71_v12 = vld [vmem:[%s2608_s1 + $0x30] sm:$0xff]  ;;  %v1475_v15 = vld [vmem:[%s2609_s2 + $0x4] ss:$8 sps:$4 sm:$0xff]   ;;  %262 = vmatprep.subr.bf16.mxu0 %v1472_v10 }
   0x6   :  { %99 = vrot.lane.b32.xlu0 %v66_v2, %s1676_s9  ;;  %103 = vrot.lane.b32.xlu1 %v68_v3, %s1676_s9  ;;  %v1474_v13 = vld [vmem:[%s2609_s2 + $0x10] ss:$8 sps:$4 sm:$0xff]   ;;  %v1477_v16 = vld [vmem:[%s2609_s2] ss:$8 sps:$4 sm:$0xff]  }
   0x7   :  { %v35_v14 = vld [vmem:[%s2607_s0 + $0x18] sm:$0xff]  ;;  %v37_v17 = vld [vmem:[%s2607_s0 + $0x28] sm:$0xff]  ;;  %v36_v18 = vld [vmem:[%s2607_s0 + $0x20] sm:$0xff]  ;;  %263 = vmatpush1.bf16.msra.mxu0 %v1474_v13 }
   0x8   :  { %52 = vst.msk [vmem:[#allocation2 + $0x18] sm:$0xff] %vm48_vm0, %v35_v14  ;;  %54 = vst.msk [vmem:[#allocation2 + $0x28] sm:$0xff] %vm48_vm0, %v37_v17  ;;  %v39_v19 = vld [vmem:[%s2607_s0 + $0x38] sm:$0xff]  ;;  %v38_v20 = vld [vmem:[%s2607_s0 + $0x30] sm:$0xff]  ;;  %264 = vmatprep.subr.bf16.mxu0 %v1475_v15 }
   0x9   :  { %53 = vst.msk [vmem:[#allocation2 + $0x20] sm:$0xff] %vm48_vm0, %v36_v18  ;;  %v74_v21 = vld [vmem:[%s2608_s1 + $0x48] sm:$0xff]  ;;  %v73_v22 = vld [vmem:[%s2608_s1 + $0x40] sm:$0xff]  ;;  %56 = vst.msk [vmem:[#allocation2 + $0x38] sm:$0xff] %vm48_vm0, %v39_v19 }
   0xa   :  { %107 = vrot.lane.b32.xlu1 %v70_v5, %s1676_s9  ;;  %105 = vrot.lane.b32.xlu0 %v69_v6, %s1676_s9  ;;  %55 = vst.msk [vmem:[#allocation2 + $0x30] sm:$0xff] %vm48_vm0, %v38_v20  ;;  %v76_v23 = vld [vmem:[%s2608_s1 + $0x58] sm:$0xff]  ;;  %v75_v24 = vld [vmem:[%s2608_s1 + $0x50] sm:$0xff] }
   0xb   :  { %265 = vmatpush1.bf16.msra.mxu0 %v1477_v16  ;;  %v41_v25 = vld [vmem:[%s2607_s0 + $0x48] sm:$0xff]  ;;  %v40_v26 = vld [vmem:[%s2607_s0 + $0x40] sm:$0xff] }
   0xc   :  { %58 = vst.msk [vmem:[#allocation2 + $0x48] sm:$0xff] %vm48_vm0, %v41_v25  ;;  %57 = vst.msk [vmem:[#allocation2 + $0x40] sm:$0xff] %vm48_vm0, %v40_v26  ;;  %v78_v27 = vld [vmem:[%s2608_s1 + $0x68] sm:$0xff]  ;;  %v77_v28 = vld [vmem:[%s2608_s1 + $0x60] sm:$0xff] }
   0xe   :  { %111 = vrot.lane.b32.xlu1 %v72_v11, %s1676_s9  ;;  %109 = vrot.lane.b32.xlu0 %v71_v12, %s1676_s9 }
  0x12   :  { %115 = vrot.lane.b32.xlu1 %v74_v21, %s1676_s9  ;;  %113 = vrot.lane.b32.xlu0 %v73_v22, %s1676_s9 }
  0x16   :  { %119 = vrot.lane.b32.xlu1 %v76_v23, %s1676_s9  ;;  %117 = vrot.lane.b32.xlu0 %v75_v24, %s1676_s9 }
  0x17   :  { %14 = vsyncpa [#allocation5], 0  ;;  %v80_v29 = vld [vmem:[%s2608_s1 + $0x78] sm:$0xff]  ;;  %v79_v30 = vld [vmem:[%s2608_s1 + $0x70] sm:$0xff]  ;;  %vm145_vm1 = vcmask 261312   ;;  %vm225_vm2 = vcmask 261120  }
  0x18   :  { %v43_v31 = vld [vmem:[%s2607_s0 + $0x58] sm:$0xff]  ;;  %v42_v32 = vld [vmem:[%s2607_s0 + $0x50] sm:$0xff]  ;;  %v45_v33 = vld [vmem:[%s2607_s0 + $0x68] sm:$0xff] }
  0x19   :  { %60 = vst.msk [vmem:[#allocation2 + $0x58] sm:$0xff] %vm48_vm0, %v43_v31  ;;  %59 = vst.msk [vmem:[#allocation2 + $0x50] sm:$0xff] %vm48_vm0, %v42_v32  ;;  %v44_v34 = vld [vmem:[%s2607_s0 + $0x60] sm:$0xff]  ;;  %v47_v35 = vld [vmem:[%s2607_s0 + $0x78] sm:$0xff] }
  0x1a   :  { %123 = vrot.lane.b32.xlu1 %v78_v27, %s1676_s9  ;;  %121 = vrot.lane.b32.xlu0 %v77_v28, %s1676_s9  ;;  %62 = vst.msk [vmem:[#allocation2 + $0x68] sm:$0xff] %vm48_vm0, %v45_v33  ;;  %61 = vst.msk [vmem:[#allocation2 + $0x60] sm:$0xff] %vm48_vm0, %v44_v34  ;;  %v46_v36 = vld [vmem:[%s2607_s0 + $0x70] sm:$0xff]  ;;  %v1483_v39 = vld [vmem:[%s2611_s4 + $0x64] ss:$8 sps:$4 sm:$0xff]  }
  0x1b   :  { %64 = vst.msk [vmem:[#allocation2 + $0x78] sm:$0xff] %vm48_vm0, %v47_v35  ;;  %63 = vst.msk [vmem:[#allocation2 + $0x70] sm:$0xff] %vm48_vm0, %v46_v36  ;;  %v1480_v37 = vld [vmem:[%s2611_s4 + $0x74] ss:$8 sps:$4 sm:$0xff]   ;;  %v1478_v38 = vld [vmem:[%s2611_s4 + $0x70] ss:$8 sps:$4 sm:$0xff]  }
  0x1c   :  { %774 = vmatprep.subr.bf16.mxu0 %v1480_v37  ;;  %1437 = vmatprep.subr.bf16.mxu1 %v1480_v37  ;;  %v1481_v40 = vld [vmem:[%s2611_s4 + $0x60] ss:$8 sps:$4 sm:$0xff]   ;;  %v1486_v41 = vld [vmem:[%s2611_s4 + $0x54] ss:$8 sps:$4 sm:$0xff]   ;;  %v1883_v42 = vld [vmem:[%s2611_s4 + $0x50] ss:$8 sps:$4 sm:$0xff]  }
  0x1d   :  { %1453 = vmatpush1.bf16.msra.mxu1 %v1478_v38  ;;  %v1888_v43 = vld [vmem:[%s2611_s4 + $0x44] ss:$8 sps:$4 sm:$0xff]   ;;  %v1895_v44 = vld [vmem:[%s2611_s4 + $0x40] ss:$8 sps:$4 sm:$0xff]   ;;  %v1900_v45 = vld [vmem:[%s2611_s4 + $0x34] ss:$8 sps:$4 sm:$0xff]  }
  0x1e   :  { %127 = vrot.lane.b32.xlu1 %v80_v29, %s1676_s9  ;;  %125 = vrot.lane.b32.xlu0 %v79_v30, %s1676_s9  ;;  %v1907_v46 = vld [vmem:[%s2611_s4 + $0x30] ss:$8 sps:$4 sm:$0xff]   ;;  %v1912_v47 = vld [vmem:[%s2611_s4 + $0x24] ss:$8 sps:$4 sm:$0xff]  }
  0x1f   :  { %1438 = vmatprep.subr.bf16.mxu1 %v1483_v39  ;;  %v1919_v48 = vld [vmem:[%s2611_s4 + $0x20] ss:$8 sps:$4 sm:$0xff]   ;;  %v1924_v49 = vld [vmem:[%s2611_s4 + $0x14] ss:$8 sps:$4 sm:$0xff]   ;;  %v1931_v50 = vld [vmem:[%s2611_s4 + $0x10] ss:$8 sps:$4 sm:$0xff]  }
  0x20   :  { %v1936_v51 = vld [vmem:[%s2611_s4 + $0x4] ss:$8 sps:$4 sm:$0xff]   ;;  %v1943_v52 = vld [vmem:[%s2611_s4] ss:$8 sps:$4 sm:$0xff]   ;;  %v1504_v30 = vld [vmem:[%s2611_s4 + $0xf4] ss:$8 sps:$4 sm:$0xff]  }
  0x21   :  { %1454 = vmatpush1.bf16.msra.mxu1 %v1481_v40  ;;  %v1502_v31 = vld [vmem:[%s2611_s4 + $0xf0] ss:$8 sps:$4 sm:$0xff]   ;;  %v1505_v32 = vld [vmem:[%s2611_s4 + $0xe0] ss:$8 sps:$4 sm:$0xff]   ;;  %v1510_v33 = vld [vmem:[%s2611_s4 + $0xd4] ss:$8 sps:$4 sm:$0xff]  }
  0x22   :  { %1439 = vmatprep.subr.bf16.mxu1 %v1486_v41  ;;  %v1508_v34 = vld [vmem:[%s2611_s4 + $0xd0] ss:$8 sps:$4 sm:$0xff]   ;;  %v1513_v35 = vld [vmem:[%s2611_s4 + $0xc4] ss:$8 sps:$4 sm:$0xff]   ;;  %v1511_v36 = vld [vmem:[%s2611_s4 + $0xc0] ss:$8 sps:$4 sm:$0xff]  }
  0x23   :  { %v1516_v37 = vld [vmem:[%s2611_s4 + $0xb4] ss:$8 sps:$4 sm:$0xff]  }
  0x25   :  { %1455 = vmatpush1.bf16.msra.mxu1 %v1883_v42 }
  0x26   :  { %1440 = vmatprep.subr.bf16.mxu1 %v1888_v43 }
  0x29   :  { %1456 = vmatpush1.bf16.msra.mxu1 %v1895_v44 }
  0x2a   :  { %1441 = vmatprep.subr.bf16.mxu1 %v1900_v45 }
  0x2d   :  { %1457 = vmatpush1.bf16.msra.mxu1 %v1907_v46 }
  0x2e   :  { %1442 = vmatprep.subr.bf16.mxu1 %v1912_v47 }
  0x31   :  { %1458 = vmatpush1.bf16.msra.mxu1 %v1919_v48 }
  0x32   :  { %1443 = vmatprep.subr.bf16.mxu1 %v1924_v49 }
  0x35   :  { %1459 = vmatpush1.bf16.msra.mxu1 %v1931_v50 }
  0x36   :  { %1444 = vmatprep.subr.bf16.mxu1 %v1936_v51 }
  0x39   :  { %1460 = vmatpush1.bf16.msra.mxu1 %v1943_v52 }
  0x3a   :  { %1445 = vmatprep.subr.bf16.mxu1 %v1504_v30 }
  0x3d   :  { %1461 = vmatpush2.bf16.msra.mxu1 %v1502_v31 }
  0x74   :  { %v98_v53 = vpop.permute.xlu0 %97  ;;  %v102_v54 = vpop.permute.xlu1 %101 }
  0x75   :  { %146 = vst.msk [vmem:[#allocation2] sm:$0xff] %vm145_vm1, %v98_v53  ;;  %148 = vst.msk [vmem:[#allocation2 + $0x10] sm:$0xff] %vm145_vm1, %v102_v54 }
  0x78   :  { %v100_v55 = vpop.permute.xlu0 %99  ;;  %v104_v56 = vpop.permute.xlu1 %103 }
  0x79   :  { %147 = vst.msk [vmem:[#allocation2 + $0x8] sm:$0xff] %vm145_vm1, %v100_v55  ;;  %149 = vst.msk [vmem:[#allocation2 + $0x18] sm:$0xff] %vm145_vm1, %v104_v56 }
  0x7c   :  { %v108_v57 = vpop.permute.xlu1 %107  ;;  %v106_v58 = vpop.permute.xlu0 %105  ;;  %v162_v59 = vld [vmem:[#allocation2] sm:$0xff]  ;;  %v164_v2 = vld [vmem:[#allocation2 + $0x10] sm:$0xff] }
  0x7d   :  { %151 = vst.msk [vmem:[#allocation2 + $0x28] sm:$0xff] %vm145_vm1, %v108_v57  ;;  %150 = vst.msk [vmem:[#allocation2 + $0x20] sm:$0xff] %vm145_vm1, %v106_v58 }
  0x80   :  { %v163_v60 = vld [vmem:[#allocation2 + $0x8] sm:$0xff]  ;;  %v112_v61 = vpop.permute.xlu1 %111  ;;  %v110_v62 = vpop.permute.xlu0 %109  ;;  %v165_v3 = vld [vmem:[#allocation2 + $0x18] sm:$0xff] }
  0x81   :  { %v178_v63 = vpack.c.bf16 %v163_v60, %v162_v59  ;;  %153 = vst.msk [vmem:[#allocation2 + $0x38] sm:$0xff] %vm145_vm1, %v112_v61  ;;  %152 = vst.msk [vmem:[#allocation2 + $0x30] sm:$0xff] %vm145_vm1, %v110_v62  ;;  %v179_v7 = vpack.c.bf16 %v165_v3, %v164_v2 }
  0x83   :  { %1333 = vmatmul.mubr.msk.bf16.vlgmr.msra.gmra.mxu0 %vm225_vm2, %v178_v63 }
  0x84   :  { %292 = vmatprep.mubr.bf16.mxu0 %v1677_v4  ;;  %v116_v0 = vpop.permute.xlu1 %115  ;;  %v114_v1 = vpop.permute.xlu0 %113  ;;  %775 = vmatpush1.bf16.msra.mxu0 %v1478_v38  ;;  %v166_v8 = vld [vmem:[#allocation2 + $0x20] sm:$0xff]  ;;  %v167_v9 = vld [vmem:[#allocation2 + $0x28] sm:$0xff]  ;;  %v1514_v38 = vld [vmem:[%s2611_s4 + $0xb0] ss:$8 sps:$4 sm:$0xff]  }
  0x85   :  { %155 = vst.msk [vmem:[#allocation2 + $0x48] sm:$0xff] %vm145_vm1, %v116_v0  ;;  %154 = vst.msk [vmem:[#allocation2 + $0x40] sm:$0xff] %vm145_vm1, %v114_v1  ;;  %776 = vmatprep.subr.bf16.mxu0 %v1483_v39  ;;  %v180_v12 = vpack.c.bf16 %v167_v9, %v166_v8  ;;  %v1519_v39 = vld [vmem:[%s2611_s4 + $0xa4] ss:$8 sps:$4 sm:$0xff]  }
  0x88   :  { %v120_v5 = vpop.permute.xlu1 %119  ;;  %v118_v6 = vpop.permute.xlu0 %117  ;;  %777 = vmatpush1.bf16.msra.mxu0 %v1481_v40  ;;  %v168_v15 = vld [vmem:[#allocation2 + $0x30] sm:$0xff]  ;;  %v169_v16 = vld [vmem:[#allocation2 + $0x38] sm:$0xff]  ;;  %v1517_v40 = vld [vmem:[%s2611_s4 + $0xa0] ss:$8 sps:$4 sm:$0xff]  }
  0x89   :  { %157 = vst.msk [vmem:[#allocation2 + $0x58] sm:$0xff] %vm145_vm1, %v120_v5  ;;  %156 = vst.msk [vmem:[#allocation2 + $0x50] sm:$0xff] %vm145_vm1, %v118_v6  ;;  %778 = vmatprep.subr.bf16.mxu0 %v1486_v41  ;;  %v181_v17 = vpack.c.bf16 %v169_v16, %v168_v15  ;;  %v1522_v41 = vld [vmem:[%s2611_s4 + $0x94] ss:$8 sps:$4 sm:$0xff]  }
  0x8b   :  { %1334 = vmatmul.mubr.msk.bf16.gmra.mxu0 %vm225_vm2, %v179_v7 }
  0x8c   :  { %302 = vmatprep.mubr.bf16.mxu0 %v1677_v4  ;;  %v124_v10 = vpop.permute.xlu1 %123  ;;  %v122_v11 = vpop.permute.xlu0 %121  ;;  %779 = vmatpush1.bf16.msra.mxu0 %v1883_v42  ;;  %v170_v18 = vld [vmem:[#allocation2 + $0x40] sm:$0xff]  ;;  %v171_v19 = vld [vmem:[#allocation2 + $0x48] sm:$0xff]  ;;  %v1520_v42 = vld [vmem:[%s2611_s4 + $0x90] ss:$8 sps:$4 sm:$0xff]  }
  0x8d   :  { %159 = vst.msk [vmem:[#allocation2 + $0x68] sm:$0xff] %vm145_vm1, %v124_v10  ;;  %158 = vst.msk [vmem:[#allocation2 + $0x60] sm:$0xff] %vm145_vm1, %v122_v11  ;;  %780 = vmatprep.subr.bf16.mxu0 %v1888_v43  ;;  %v182_v20 = vpack.c.bf16 %v171_v19, %v170_v18  ;;  %v1525_v43 = vld [vmem:[%s2611_s4 + $0x84] ss:$8 sps:$4 sm:$0xff]  }
  0x90   :  { %v128_v13 = vpop.permute.xlu1 %127  ;;  %v126_v14 = vpop.permute.xlu0 %125  ;;  %781 = vmatpush1.bf16.msra.mxu0 %v1895_v44  ;;  %v172_v21 = vld [vmem:[#allocation2 + $0x50] sm:$0xff]  ;;  %v173_v22 = vld [vmem:[#allocation2 + $0x58] sm:$0xff]  ;;  %v1523_v44 = vld [vmem:[%s2611_s4 + $0x80] ss:$8 sps:$4 sm:$0xff]  }
  0x91   :  { %161 = vst.msk [vmem:[#allocation2 + $0x78] sm:$0xff] %vm145_vm1, %v128_v13  ;;  %160 = vst.msk [vmem:[#allocation2 + $0x70] sm:$0xff] %vm145_vm1, %v126_v14  ;;  %782 = vmatprep.subr.bf16.mxu0 %v1900_v45  ;;  %v183_v23 = vpack.c.bf16 %v173_v22, %v172_v21  ;;  %v195_v45 = vlaneseq }
  0x93   :  { %1335 = vmatmul.mubr.msk.bf16.gmra.mxu0 %vm225_vm2, %v180_v12 }
  0x94   :  { %312 = vmatprep.mubr.bf16.mxu0 %v1677_v4  ;;  %783 = vmatpush1.bf16.msra.mxu0 %v1907_v46  ;;  %v174_v24 = vld [vmem:[#allocation2 + $0x60] sm:$0xff]  ;;  %v175_v25 = vld [vmem:[#allocation2 + $0x68] sm:$0xff]  ;;  %v2037_v46 = vshrl.u32 %v195_v45, 7 }
  0x95   :  { %784 = vmatprep.subr.bf16.mxu0 %v1912_v47  ;;  %v184_v26 = vpack.c.bf16 %v175_v25, %v174_v24 }
  0x96   :  { %v2040_v47 = vsub.s32 0, %v2037_v46 }
  0x98   :  { %785 = vmatpush1.bf16.msra.mxu0 %v1919_v48  ;;  %v176_v27 = vld [vmem:[#allocation2 + $0x70] sm:$0xff]  ;;  %v177_v28 = vld [vmem:[#allocation2 + $0x78] sm:$0xff]  ;;  %v186_v48 = vld [vmem:[%s2610_s3] sm:$0x3] }
  0x99   :  { %786 = vmatprep.subr.bf16.mxu0 %v1924_v49  ;;  %v185_v29 = vpack.c.bf16 %v177_v28, %v176_v27  ;;  %v2046_v49 = vsub.s32 1, %v2037_v46 }
  0x9b   :  { %1336 = vmatmul.mubr.msk.bf16.gmra.mxu0 %vm225_vm2, %v181_v17 }
  0x9c   :  { %322 = vmatprep.mubr.bf16.mxu0 %v1677_v4  ;;  %787 = vmatpush1.bf16.msra.mxu0 %v1931_v50  ;;  %v2049_v50 = vrot.slane %v186_v48, %v2040_v47 }
  0x9d   :  { %788 = vmatprep.subr.bf16.mxu0 %v1936_v51  ;;  %v2052_v51 = vrot.slane %v186_v48, %v2046_v49 }
  0xa0   :  { %789 = vmatpush1.bf16.msra.mxu0 %v1943_v52 }
  0xa1   :  { %790 = vmatprep.subr.bf16.mxu0 %v1504_v30 }
  0xa3   :  { %1337 = vmatmul.mubr.msk.bf16.gmra.mxu0 %vm225_vm2, %v182_v20 }
  0xa4   :  { %332 = vmatprep.mubr.bf16.mxu0 %v1677_v4  ;;  %791 = vmatpush2.bf16.msra.mxu0 %v1502_v31 }
  0xab   :  { %1338 = vmatmul.mubr.msk.bf16.gmra.mxu0 %vm225_vm2, %v183_v23 }
  0xac   :  { %342 = vmatprep.mubr.bf16.mxu0 %v1677_v4 }
  0xb3   :  { %1339 = vmatmul.mubr.msk.bf16.gmra.mxu0 %vm225_vm2, %v184_v26 }
  0xb4   :  { %352 = vmatprep.mubr.bf16.mxu0 %v1677_v4  ;;  %v1507_v4 = vld [vmem:[%s2611_s4 + $0xe4] ss:$8 sps:$4 sm:$0xff]  }
  0xb5   :  { %792 = vmatprep.subr.bf16.mxu0 %v1507_v4  ;;  %1446 = vmatprep.subr.bf16.mxu1 %v1507_v4 }
  0xb6   :  { %793 = vmatpush2.bf16.msra.mxu0 %v1505_v32  ;;  %1462 = vmatpush2.bf16.msra.mxu1 %v1505_v32 }
  0xb7   :  { %794 = vmatprep.subr.bf16.mxu0 %v1510_v33  ;;  %1447 = vmatprep.subr.bf16.mxu1 %v1510_v33 }
  0xba   :  { %795 = vmatpush2.bf16.msra.mxu0 %v1508_v34  ;;  %1463 = vmatpush2.bf16.msra.mxu1 %v1508_v34 }
  0xbb   :  { %1340 = vmatmul.mubr.msk.bf16.gmra.mxu0 %vm225_vm2, %v185_v29  ;;  %796 = vmatprep.subr.bf16.mxu0 %v1513_v35 }
  0xbc   :  { %1448 = vmatprep.subr.bf16.mxu1 %v1513_v35 }
  0xbe   :  { %797 = vmatpush2.bf16.msra.mxu0 %v1511_v36  ;;  %1464 = vmatpush2.bf16.msra.mxu1 %v1511_v36 }
  0xbf   :  { %798 = vmatprep.subr.bf16.mxu0 %v1516_v37  ;;  %1449 = vmatprep.subr.bf16.mxu1 %v1516_v37 }
  0xc2   :  { %799 = vmatpush2.bf16.msra.mxu0 %v1514_v38  ;;  %1465 = vmatpush2.bf16.msra.mxu1 %v1514_v38 }
  0xc3   :  { %800 = vmatprep.subr.bf16.mxu0 %v1519_v39  ;;  %1450 = vmatprep.subr.bf16.mxu1 %v1519_v39 }
  0xc6   :  { %801 = vmatpush2.bf16.msra.mxu0 %v1517_v40  ;;  %1466 = vmatpush2.bf16.msra.mxu1 %v1517_v40 }
  0xc7   :  { %802 = vmatprep.subr.bf16.mxu0 %v1522_v41  ;;  %1451 = vmatprep.subr.bf16.mxu1 %v1522_v41 }
  0xca   :  { %803 = vmatpush2.bf16.msra.mxu0 %v1520_v42  ;;  %1467 = vmatpush2.bf16.msra.mxu1 %v1520_v42 }
  0xcb   :  { %804 = vmatprep.subr.bf16.mxu0 %v1525_v43  ;;  %1452 = vmatprep.subr.bf16.mxu1 %v1525_v43 }
  0xce   :  { %805 = vmatpush2.bf16.msra.mxu0 %v1523_v44  ;;  %1468 = vmatpush2.bf16.msra.mxu1 %v1523_v44 }
 0x143   :  { %v284_v52 = vpop.f32.mrf.mxu0 }
 0x144   :  { %v2055_v53 = vadd.f32 %v284_v52, %v2049_v50 }
 0x145   :  { %v286_v54 = vpop.f32.mrf.mxu0 }
 0x146   :  { %v395_v55 = vmin.f32 %v2055_v53, 0.0  ;;  %v2059_v56 = vadd.f32 %v286_v54, %v2052_v51  ;;  %vm363_vm3 = vcmp.gt.f32.partialorder %v2055_v53, 0.0 }
 0x147   :  { %v288_v57 = vpop.f32.mrf.mxu0 }
 0x148   :  { %v396_v58 = vmin.f32 %v2059_v56, 0.0  ;;  %v2063_v59 = vadd.f32 %v288_v57, %v2049_v50  ;;  %v427_v60 = vmul.f32 1.442695, %v395_v55  ;;  %vm364_vm4 = vcmp.gt.f32.partialorder %v2059_v56, 0.0 }
 0x149   :  { %v290_v61 = vpop.f32.mrf.mxu0 }
 0x14a   :  { %v397_v62 = vmin.f32 %v2063_v59, 0.0  ;;  %v429_v63 = vmul.f32 1.442695, %v396_v58  ;;  %v2067_v0 = vadd.f32 %v290_v61, %v2052_v51  ;;  %1526 = vpow2.f32 %v427_v60 }
 0x14b   :  { %v294_v1 = vpop.f32.mrf.mxu0  ;;  %vm365_vm5 = vcmp.gt.f32.partialorder %v2063_v59, 0.0 }
 0x14c   :  { %v431_v2 = vmul.f32 1.442695, %v397_v62  ;;  %v2070_v3 = vadd.f32 %v294_v1, %v2049_v50  ;;  %v398_v5 = vmin.f32 %v2067_v0, 0.0  ;;  %vm366_vm6 = vcmp.gt.f32.partialorder %v2067_v0, 0.0 }
 0x14d   :  { %v296_v6 = vpop.f32.mrf.mxu0 }
 0x14e   :  { %1528 = vpow2.f32 %v431_v2  ;;  %v2074_v7 = vadd.f32 %v296_v6, %v2052_v51  ;;  %v433_v8 = vmul.f32 1.442695, %v398_v5  ;;  %v399_v9 = vmin.f32 %v2070_v3, 0.0 }
 0x14f   :  { %1530 = vpow2.f32 %v429_v63  ;;  %v298_v10 = vpop.f32.mrf.mxu0  ;;  %vm367_vm7 = vcmp.gt.f32.partialorder %v2070_v3, 0.0 }
 0x150   :  { %v400_v11 = vmin.f32 %v2074_v7, 0.0  ;;  %v2079_v12 = vadd.f32 %v298_v10, %v2049_v50  ;;  %1532 = vpow2.f32 %v433_v8  ;;  %v435_v16 = vmul.f32 1.442695, %v399_v9 }
 0x151   :  { %v300_v13 = vpop.f32.mrf.mxu0  ;;  %vm368_vm9 = vcmp.gt.f32.partialorder %v2074_v7, 0.0 }
 0x152   :  { %v437_v14 = vmul.f32 1.442695, %v400_v11  ;;  %v401_v15 = vmin.f32 %v2079_v12, 0.0  ;;  %v2083_v17 = vadd.f32 %v300_v13, %v2052_v51  ;;  %vm369_vm10 = vcmp.gt.f32.partialorder %v2079_v12, 0.0 }
 0x153   :  { %v304_v18 = vpop.f32.mrf.mxu0 }
 0x154   :  { %v439_v19 = vmul.f32 1.442695, %v401_v15  ;;  %v2086_v20 = vadd.f32 %v304_v18, %v2049_v50  ;;  %1534 = vpow2.f32 %v437_v14  ;;  %v402_v21 = vmin.f32 %v2083_v17, 0.0 }
 0x155   :  { %v306_v22 = vpop.f32.mrf.mxu0  ;;  %vm370_vm8 = vcmp.gt.f32.partialorder %v2083_v17, 0.0 }
 0x156   :  { %1536 = vpow2.f32 %v439_v19  ;;  %v403_v23 = vmin.f32 %v2086_v20, 0.0  ;;  %v2091_v24 = vadd.f32 %v306_v22, %v2052_v51  ;;  %v441_v25 = vmul.f32 1.442695, %v402_v21 }
 0x157   :  { %1538 = vpow2.f32 %v435_v16  ;;  %v308_v26 = vpop.f32.mrf.mxu0  ;;  %v1527_v31 = vpop.eup %1526  ;;  %vm371_vm14 = vcmp.gt.f32.partialorder %v2086_v20, 0.0 }
 0x158   :  { %v404_v27 = vmin.f32 %v2091_v24, 0.0  ;;  %1540 = vpow2.f32 %v441_v25  ;;  %v443_v28 = vmul.f32 1.442695, %v403_v23  ;;  %v2095_v29 = vadd.f32 %v308_v26, %v2049_v50 }
 0x159   :  { %v310_v30 = vpop.f32.mrf.mxu0  ;;  %v1341_v48 = vadd.f32 -1.0, %v1527_v31  ;;  %vm372_vm12 = vcmp.gt.f32.partialorder %v2091_v24, 0.0 }
 0x15a   :  { %v445_v4 = vmul.f32 1.442695, %v404_v27  ;;  %v2098_v32 = vadd.f32 %v310_v30, %v2052_v51  ;;  %v405_v34 = vmin.f32 %v2095_v29, 0.0  ;;  %1542 = vpow2.f32 %v443_v28 }
 0x15b   :  { %v1529_v33 = vpop.eup %1528  ;;  %v314_v35 = vpop.f32.mrf.mxu0  ;;  %v523_v9 = vsel %vm363_vm3, %v2055_v53, %v1341_v48  ;;  %vm373_vm13 = vcmp.gt.f32.partialorder %v2095_v29, 0.0 }
 0x15c   :  { %v1531_v36 = vpop.eup %1530  ;;  %v406_v37 = vmin.f32 %v2098_v32, 0.0  ;;  %v447_v38 = vmul.f32 1.442695, %v405_v34  ;;  %v2104_v39 = vadd.f32 %v314_v35, %v2049_v50  ;;  %v1343_v42 = vadd.f32 -1.0, %v1529_v33 }
 0x15d   :  { %v316_v40 = vpop.f32.mrf.mxu0  ;;  %v1533_v41 = vpop.eup %1532  ;;  %1544 = vpow2.f32 %v445_v4  ;;  %v1342_v55 = vadd.f32 -1.0, %v1531_v36  ;;  %vm374_vm11 = vcmp.gt.f32.partialorder %v2098_v32, 0.0 }
 0x15e   :  { %v449_v43 = vmul.f32 1.442695, %v406_v37  ;;  %v2107_v44 = vadd.f32 %v316_v40, %v2052_v51  ;;  %1546 = vpow2.f32 %v447_v38  ;;  %v407_v52 = vmin.f32 %v2104_v39, 0.0 }
 0x15f   :  { %v318_v54 = vpop.f32.mrf.mxu0  ;;  %v1344_v60 = vadd.f32 -1.0, %v1533_v41  ;;  %v525_v1 = vsel %vm365_vm5, %v2063_v59, %v1343_v42  ;;  %v524_v11 = vsel %vm364_vm4, %v2059_v56, %v1342_v55  ;;  %vm375_vm3 = vcmp.gt.f32.partialorder %v2104_v39, 0.0 }
 0x160   :  { %1548 = vpow2.f32 %v449_v43  ;;  %v408_v57 = vmin.f32 %v2107_v44, 0.0  ;;  %v2112_v58 = vadd.f32 %v318_v54, %v2049_v50  ;;  %v451_v61 = vmul.f32 1.442695, %v407_v52 }
 0x161   :  { %v320_v62 = vpop.f32.mrf.mxu0  ;;  %v1535_v63 = vpop.eup %1534  ;;  %v526_v13 = vsel %vm366_vm6, %v2067_v0, %v1344_v60  ;;  %v555_v18 = vpack.c.bf16 %v525_v1, %v523_v9  ;;  %vm376_vm2 = vcmp.gt.f32.partialorder %v2107_v44, 0.0 }
 0x162   :  { %v453_v2 = vmul.f32 1.442695, %v408_v57  ;;  %v409_v5 = vmin.f32 %v2112_v58, 0.0  ;;  %v2120_v6 = vadd.f32 %v320_v62, %v2052_v51  ;;  %1550 = vpow2.f32 %v451_v61 }
 0x163   :  { %v1537_v8 = vpop.eup %1536  ;;  %v324_v10 = vpop.f32.mrf.mxu0  ;;  %v556_v19 = vpack.c.bf16 %v526_v13, %v524_v11  ;;  %v1346_v22 = vadd.f32 -1.0, %v1535_v63  ;;  %vm377_vm15 = vcmp.gt.f32.partialorder %v2112_v58, 0.0 }
 0x164   :  { %v1539_v14 = vpop.eup %1538  ;;  %v455_v15 = vmul.f32 1.442695, %v409_v5  ;;  %v410_v59 = vmin.f32 %v2120_v6, 0.0  ;;  %v2129_v16 = vadd.f32 %v324_v10, %v2049_v50  ;;  %1552 = vpow2.f32 %v453_v2 }
 0x165   :  { %v326_v21 = vpop.f32.mrf.mxu0  ;;  %v1541_v23 = vpop.eup %1540  ;;  %v1347_v25 = vadd.f32 -1.0, %v1537_v8  ;;  %806 = vmatprep.mubr.bf16.mxu0 %v556_v19  ;;  %v1345_v28 = vadd.f32 -1.0, %v1539_v14  ;;  %v528_v38 = vsel %vm368_vm9, %v2074_v7, %v1346_v22  ;;  %vm378_vm0 = vcmp.gt.f32.partialorder %v2120_v6, 0.0 }
 0x166   :  { %1554 = vpow2.f32 %v455_v15  ;;  %v457_v53 = vmul.f32 1.442695, %v410_v59  ;;  %v411_v56 = vmin.f32 %v2129_v16, 0.0  ;;  %v2134_v0 = vadd.f32 %v326_v21, %v2052_v51  ;;  %807 = vmatmul.mubr.bf16.vlgmr.msra.gmra.mxu0 %v555_v18 }
 0x167   :  { %v328_v26 = vpop.f32.mrf.mxu0  ;;  %v1348_v27 = vadd.f32 -1.0, %v1541_v23  ;;  %v1543_v35 = vpop.eup %1542  ;;  %v529_v40 = vsel %vm369_vm10, %v2079_v12, %v1347_v25  ;;  %v527_v52 = vsel %vm367_vm7, %v2070_v3, %v1345_v28  ;;  %vm379_vm7 = vcmp.gt.f32.partialorder %v2129_v16, 0.0 }
 0x168   :  { %1556 = vpow2.f32 %v457_v53  ;;  %v459_v30 = vmul.f32 1.442695, %v411_v56  ;;  %v2138_v31 = vadd.f32 %v328_v26, %v2049_v50  ;;  %v412_v4 = vmin.f32 %v2134_v0, 0.0 }
 0x169   :  { %v330_v33 = vpop.f32.mrf.mxu0  ;;  %v530_v34 = vsel %vm370_vm8, %v2083_v17, %v1348_v27  ;;  %v557_v7 = vpack.c.bf16 %v529_v40, %v527_v52  ;;  %v1349_v9 = vadd.f32 -1.0, %v1543_v35  ;;  %vm380_vm6 = vcmp.gt.f32.partialorder %v2134_v0, 0.0 }
 0x16a   :  { %v413_v36 = vmin.f32 %v2138_v31, 0.0  ;;  %v2146_v37 = vadd.f32 %v330_v33, %v2052_v51  ;;  %v1545_v41 = vpop.eup %1544  ;;  %v461_v42 = vmul.f32 1.442695, %v412_v4  ;;  %v558_v48 = vpack.c.bf16 %v530_v34, %v528_v38 }
 0x16b   :  { %v334_v43 = vpop.f32.mrf.mxu0  ;;  %v1547_v54 = vpop.eup %1546  ;;  %1558 = vpow2.f32 %v459_v30  ;;  %v1350_v62 = vadd.f32 -1.0, %v1545_v41  ;;  %v531_v28 = vsel %vm371_vm14, %v2086_v20, %v1349_v9  ;;  %vm381_vm4 = vcmp.gt.f32.partialorder %v2138_v31, 0.0 }
 0x16c   :  { %v463_v17 = vmul.f32 1.442695, %v413_v36  ;;  %v414_v55 = vmin.f32 %v2146_v37, 0.0  ;;  %v2155_v57 = vadd.f32 %v334_v43, %v2049_v50  ;;  %1560 = vpow2.f32 %v461_v42  ;;  %816 = vmatprep.mubr.bf16.mxu0 %v558_v48 }
 0x16d   :  { %v1549_v60 = vpop.eup %1548  ;;  %v336_v12 = vpop.f32.mrf.mxu0  ;;  %v1351_v63 = vadd.f32 -1.0, %v1547_v54  ;;  %v532_v19 = vsel %vm372_vm12, %v2091_v24, %v1350_v62  ;;  %vm382_vm5 = vcmp.gt.f32.partialorder %v2146_v37, 0.0 }
 0x16e   :  { %1562 = vpow2.f32 %v463_v17  ;;  %v465_v61 = vmul.f32 1.442695, %v414_v55  ;;  %v415_v1 = vmin.f32 %v2155_v57, 0.0  ;;  %v2159_v3 = vadd.f32 %v336_v12, %v2052_v51  ;;  %817 = vmatmul.mubr.bf16.gmra.mxu0 %v557_v7 }
 0x16f   :  { %v338_v2 = vpop.f32.mrf.mxu0  ;;  %v1352_v5 = vadd.f32 -1.0, %v1549_v60  ;;  %v1551_v10 = vpop.eup %1550  ;;  %v533_v21 = vsel %vm373_vm13, %v2095_v29, %v1351_v63 }
 0x170   :  { %1564 = vpow2.f32 %v465_v61  ;;  %v2163_v8 = vadd.f32 %v338_v2, %v2049_v50  ;;  %v416_v11 = vmin.f32 %v2159_v3, 0.0  ;;  %v467_v23 = vmul.f32 1.442695, %v415_v1 }
 0x171   :  { %v340_v13 = vpop.f32.mrf.mxu0  ;;  %v534_v14 = vsel %vm374_vm11, %v2098_v32, %v1352_v5  ;;  %v1553_v15 = vpop.eup %1552  ;;  %v559_v24 = vpack.c.bf16 %v533_v21, %v531_v28  ;;  %v1353_v35 = vadd.f32 -1.0, %v1551_v10  ;;  %vm384_vm8 = vcmp.gt.f32.partialorder %v2159_v3, 0.0 }
 0x172   :  { %v417_v59 = vmin.f32 %v2163_v8, 0.0  ;;  %v2171_v18 = vadd.f32 %v340_v13, %v2052_v51  ;;  %v469_v53 = vmul.f32 1.442695, %v416_v11  ;;  %v560_v25 = vpack.c.bf16 %v534_v14, %v532_v19 }
 0x173   :  { %v1555_v22 = vpop.eup %1554  ;;  %v344_v56 = vpop.f32.mrf.mxu0  ;;  %v1354_v34 = vadd.f32 -1.0, %v1553_v15  ;;  %v535_v2 = vsel %vm375_vm3, %v2104_v39, %v1353_v35  ;;  %vm385_vm10 = vcmp.gt.f32.partialorder %v2163_v8, 0.0  ;;  %vm383_vm11 = vcmp.gt.f32.partialorder %v2155_v57, 0.0 }
 0x174   :  { %v471_v26 = vmul.f32 1.442695, %v417_v59  ;;  %v418_v32 = vmin.f32 %v2171_v18, 0.0  ;;  %v2178_v27 = vadd.f32 %v344_v56, %v2049_v50  ;;  %1566 = vpow2.f32 %v469_v53  ;;  %826 = vmatprep.mubr.bf16.mxu0 %v560_v25 }
 0x175   :  { %v1557_v30 = vpop.eup %1556  ;;  %v346_v29 = vpop.f32.mrf.mxu0  ;;  %v1355_v4 = vadd.f32 -1.0, %v1555_v22  ;;  %v536_v7 = vsel %vm376_vm2, %v2107_v44, %v1354_v34  ;;  %vm386_vm9 = vcmp.gt.f32.partialorder %v2171_v18, 0.0 }
 0x176   :  { %1568 = vpow2.f32 %v471_v26  ;;  %v473_v33 = vmul.f32 1.442695, %v418_v32  ;;  %v419_v36 = vmin.f32 %v2178_v27, 0.0  ;;  %v2183_v38 = vadd.f32 %v346_v29, %v2052_v51  ;;  %827 = vmatmul.mubr.bf16.gmra.mxu0 %v559_v24 }
 0x177   :  { %1570 = vpow2.f32 %v467_v23  ;;  %v348_v40 = vpop.f32.mrf.mxu0  ;;  %v1356_v41 = vadd.f32 -1.0, %v1557_v30  ;;  %v537_v54 = vsel %vm377_vm15, %v2112_v58, %v1355_v4  ;;  %vm387_vm15 = vcmp.gt.f32.partialorder %v2178_v27, 0.0 }
 0x178   :  { %1572 = vpow2.f32 %v473_v33  ;;  %v2187_v20 = vadd.f32 %v348_v40, %v2049_v50  ;;  %v1559_v42 = vpop.eup %1558  ;;  %v420_v43 = vmin.f32 %v2183_v38, 0.0  ;;  %v475_v61 = vmul.f32 1.442695, %v419_v36 }
 0x179   :  { %v350_v48 = vpop.f32.mrf.mxu0  ;;  %v538_v52 = vsel %vm378_vm0, %v2120_v6, %v1356_v41  ;;  %v1561_v17 = vpop.eup %1560  ;;  %v561_v9 = vpack.c.bf16 %v537_v54, %v535_v2  ;;  %v1357_v15 = vadd.f32 -1.0, %v1559_v42  ;;  %vm388_vm12 = vcmp.gt.f32.partialorder %v2183_v38, 0.0 }
 0x17a   :  { %v421_v55 = vmin.f32 %v2187_v20, 0.0  ;;  %v2197_v60 = vadd.f32 %v350_v48, %v2052_v51  ;;  %v477_v62 = vmul.f32 1.442695, %v420_v43  ;;  %v562_v1 = vpack.c.bf16 %v538_v52, %v536_v7 }
 0x17b   :  { %v1563_v12 = vpop.eup %1562  ;;  %v354_v63 = vpop.f32.mrf.mxu0  ;;  %v1358_v14 = vadd.f32 -1.0, %v1561_v17  ;;  %v539_v33 = vsel %vm379_vm7, %v2129_v16, %v1357_v15  ;;  %vm389_vm14 = vcmp.gt.f32.partialorder %v2187_v20, 0.0 }
 0x17c   :  { %v479_v6 = vmul.f32 1.442695, %v421_v55  ;;  %v422_v58 = vmin.f32 %v2197_v60, 0.0  ;;  %v2203_v5 = vadd.f32 %v354_v63, %v2049_v50  ;;  %1574 = vpow2.f32 %v477_v62  ;;  %836 = vmatprep.mubr.bf16.mxu1 %v562_v1 }
 0x17d   :  { %v1565_v10 = vpop.eup %1564  ;;  %v356_v11 = vpop.f32.mrf.mxu0  ;;  %v1359_v13 = vadd.f32 -1.0, %v1563_v12  ;;  %837 = vmatmul.mubr.bf16.vlgmr.msra.gmra.mxu1 %v561_v9  ;;  %vm390_vm13 = vcmp.gt.f32.partialorder %v2197_v60, 0.0 }
 0x17e   :  { %1576 = vpow2.f32 %v479_v6  ;;  %v481_v44 = vmul.f32 1.442695, %v422_v58  ;;  %v423_v39 = vmin.f32 %v2203_v5, 0.0  ;;  %v2207_v59 = vadd.f32 %v356_v11, %v2052_v51 }
 0x17f   :  { %1578 = vpow2.f32 %v475_v61  ;;  %v358_v19 = vpop.f32.mrf.mxu0  ;;  %v1360_v21 = vadd.f32 -1.0, %v1565_v10  ;;  %v541_v25 = vsel %vm381_vm4, %v2138_v31, %v1359_v13  ;;  %vm391_vm4 = vcmp.gt.f32.partialorder %v2203_v5, 0.0 }
 0x180   :  { %1580 = vpow2.f32 %v481_v44  ;;  %v2212_v22 = vadd.f32 %v358_v19, %v2049_v50  ;;  %v424_v23 = vmin.f32 %v2207_v59, 0.0  ;;  %v540_v50 = vsel %vm380_vm6, %v2134_v0, %v1358_v14 }
 0x181   :  { %v360_v53 = vpop.f32.mrf.mxu0  ;;  %v542_v56 = vsel %vm382_vm5, %v2146_v37, %v1360_v21  ;;  %v1567_v26 = vpop.eup %1566  ;;  %v483_v24 = vmul.f32 1.442695, %v423_v39  ;;  %v563_v35 = vpack.c.bf16 %v541_v25, %v539_v33  ;;  %vm392_vm0 = vcmp.gt.f32.partialorder %v2207_v59, 0.0 }
 0x182   :  { %v425_v32 = vmin.f32 %v2212_v22, 0.0  ;;  %v2221_v28 = vadd.f32 %v360_v53, %v2052_v51  ;;  %v485_v29 = vmul.f32 1.442695, %v424_v23  ;;  %v564_v4 = vpack.c.bf16 %v542_v56, %v540_v50  ;;  %v187_v23 = vld [vmem:[%s2612_s5] sm:$0x3] }
 0x183   :  { %v1569_v30 = vpop.eup %1568  ;;  %v1362_v36 = vadd.f32 -1.0, %v1567_v26  ;;  %vm393_vm3 = vcmp.gt.f32.partialorder %v2212_v22, 0.0  ;;  %v2254_v53 = vrot.slane %v187_v23, %v2040_v47 }
 0x184   :  { %v1571_v34 = vpop.eup %1570  ;;  %v487_v37 = vmul.f32 1.442695, %v425_v32  ;;  %v426_v31 = vmin.f32 %v2221_v28, 0.0  ;;  %1582 = vpow2.f32 %v485_v29  ;;  %846 = vmatprep.mubr.bf16.mxu1 %v564_v4  ;;  %v1363_v41 = vadd.f32 -1.0, %v1569_v30 }
 0x185   :  { %v1573_v40 = vpop.eup %1572  ;;  %847 = vmatmul.mubr.bf16.gmra.mxu1 %v563_v35  ;;  %v1361_v16 = vadd.f32 -1.0, %v1571_v34  ;;  %v544_v42 = vsel %vm384_vm8, %v2159_v3, %v1362_v36  ;;  %vm394_vm2 = vcmp.gt.f32.partialorder %v2221_v28, 0.0 }
 0x186   :  { %1584 = vpow2.f32 %v487_v37  ;;  %v489_v51 = vmul.f32 1.442695, %v426_v31  ;;  %v1364_v0 = vadd.f32 -1.0, %v1573_v40  ;;  %v545_v52 = vsel %vm385_vm10, %v2163_v8, %v1363_v41 }
 0x187   :  { %1586 = vpow2.f32 %v483_v24  ;;  %v543_v55 = vsel %vm383_vm11, %v2155_v57, %v1361_v16 }
 0x188   :  { %1588 = vpow2.f32 %v489_v51  ;;  %v546_v43 = vsel %vm386_vm9, %v2171_v18, %v1364_v0  ;;  %v565_v12 = vpack.c.bf16 %v545_v52, %v543_v55 }
 0x189   :  { %v566_v48 = vpack.c.bf16 %v546_v43, %v544_v42  ;;  %v1575_v54 = vpop.eup %1574 }
 0x18a   :  { %v1366_v61 = vadd.f32 -1.0, %v1575_v54 }
 0x18b   :  { %v1577_v17 = vpop.eup %1576  ;;  %856 = vmatprep.mubr.bf16.mxu1 %v566_v48 }
 0x18c   :  { %v1579_v7 = vpop.eup %1578  ;;  %v1367_v63 = vadd.f32 -1.0, %v1577_v17  ;;  %v548_v8 = vsel %vm388_vm12, %v2183_v38, %v1366_v61 }
 0x18d   :  { %v1581_v62 = vpop.eup %1580  ;;  %857 = vmatmul.mubr.bf16.gmra.mxu1 %v565_v12  ;;  %v1365_v3 = vadd.f32 -1.0, %v1579_v7 }
 0x18e   :  { %v1368_v1 = vadd.f32 -1.0, %v1581_v62  ;;  %v549_v57 = vsel %vm389_vm14, %v2187_v20, %v1367_v63 }
 0x18f   :  { %v547_v9 = vsel %vm387_vm15, %v2178_v27, %v1365_v3  ;;  %v188_v3 = vld [vmem:[%s2613_s6] sm:$0x3] }
 0x190   :  { %v550_v18 = vsel %vm390_vm13, %v2197_v60, %v1368_v1  ;;  %v567_v11 = vpack.c.bf16 %v549_v57, %v547_v9 }
 0x191   :  { %v568_v2 = vpack.c.bf16 %v550_v18, %v548_v8  ;;  %v1583_v6 = vpop.eup %1582 }
 0x192   :  { %v1370_v13 = vadd.f32 -1.0, %v1583_v6 }
 0x193   :  { %v1585_v58 = vpop.eup %1584  ;;  %866 = vmatprep.mubr.bf16.mxu1 %v568_v2 }
 0x194   :  { %v1587_v10 = vpop.eup %1586  ;;  %v1371_v14 = vadd.f32 -1.0, %v1585_v58  ;;  %v552_v20 = vsel %vm392_vm0, %v2207_v59, %v1370_v13  ;;  %v2257_v59 = vrot.slane %v187_v23, %v2046_v49  ;;  %v2309_v13 = vrot.slane %v188_v3, %v2046_v49 }
 0x195   :  { %v1589_v44 = vpop.eup %1588  ;;  %867 = vmatmul.mubr.bf16.gmra.mxu1 %v567_v11  ;;  %v1369_v38 = vadd.f32 -1.0, %v1587_v10  ;;  %v2306_v11 = vrot.slane %v188_v3, %v2040_v47 }
 0x196   :  { %v1372_v15 = vadd.f32 -1.0, %v1589_v44  ;;  %v553_v27 = vsel %vm393_vm3, %v2212_v22, %v1371_v14 }
 0x197   :  { %v551_v19 = vsel %vm391_vm4, %v2203_v5, %v1369_v38 }
 0x198   :  { %v554_v60 = vsel %vm394_vm2, %v2221_v28, %v1372_v15  ;;  %v569_v21 = vpack.c.bf16 %v553_v27, %v551_v19 }
 0x199   :  { %v570_v39 = vpack.c.bf16 %v554_v60, %v552_v20 }
 0x19b   :  { %876 = vmatprep.mubr.bf16.mxu1 %v570_v39 }
 0x19d   :  { %877 = vmatmul.mubr.bf16.gmra.mxu1 %v569_v21 }
 0x226   :  { %v808_v56 = vpop.f32.mrf.mxu0 }
 0x227   :  { %v2260_v22 = vadd.f32 %v808_v56, %v2254_v53 }
 0x228   :  { %v810_v25 = vpop.f32.mrf.mxu0 }
 0x229   :  { %v919_v26 = vmin.f32 %v2260_v22, 0.0  ;;  %v2264_v5 = vadd.f32 %v810_v25, %v2257_v59  ;;  %vm887_vm5 = vcmp.gt.f32.partialorder %v2260_v22, 0.0 }
 0x22a   :  { %v812_v32 = vpop.f32.mrf.mxu0 }
 0x22b   :  { %v951_v28 = vmul.f32 1.442695, %v919_v26  ;;  %v920_v50 = vmin.f32 %v2264_v5, 0.0  ;;  %v2268_v30 = vadd.f32 %v812_v32, %v2254_v53  ;;  %vm888_vm6 = vcmp.gt.f32.partialorder %v2264_v5, 0.0 }
 0x22c   :  { %v814_v24 = vpop.f32.mrf.mxu0 }
 0x22d   :  { %1590 = vpow2.f32 %v951_v28  ;;  %v953_v29 = vmul.f32 1.442695, %v920_v50  ;;  %v921_v4 = vmin.f32 %v2268_v30, 0.0  ;;  %v2272_v33 = vadd.f32 %v814_v24, %v2257_v59 }
 0x22e   :  { %v818_v34 = vpop.f32.mrf.mxu0  ;;  %vm889_vm7 = vcmp.gt.f32.partialorder %v2268_v30, 0.0 }
 0x22f   :  { %1592 = vpow2.f32 %v953_v29  ;;  %v955_v37 = vmul.f32 1.442695, %v921_v4  ;;  %v2275_v31 = vadd.f32 %v818_v34, %v2254_v53  ;;  %v922_v35 = vmin.f32 %v2272_v33, 0.0 }
 0x230   :  { %v820_v36 = vpop.f32.mrf.mxu0  ;;  %vm890_vm8 = vcmp.gt.f32.partialorder %v2272_v33, 0.0 }
 0x231   :  { %v923_v40 = vmin.f32 %v2275_v31, 0.0  ;;  %v2280_v41 = vadd.f32 %v820_v36, %v2257_v59  ;;  %1594 = vpow2.f32 %v955_v37  ;;  %v957_v51 = vmul.f32 1.442695, %v922_v35 }
 0x232   :  { %v822_v0 = vpop.f32.mrf.mxu0  ;;  %vm891_vm9 = vcmp.gt.f32.partialorder %v2275_v31, 0.0 }
 0x233   :  { %v924_v16 = vmin.f32 %v2280_v41, 0.0  ;;  %v2284_v42 = vadd.f32 %v822_v0, %v2254_v53  ;;  %1596 = vpow2.f32 %v957_v51  ;;  %v959_v43 = vmul.f32 1.442695, %v923_v40 }
 0x234   :  { %v824_v48 = vpop.f32.mrf.mxu0  ;;  %vm892_vm10 = vcmp.gt.f32.partialorder %v2280_v41, 0.0 }
 0x235   :  { %v925_v52 = vmin.f32 %v2284_v42, 0.0  ;;  %v961_v54 = vmul.f32 1.442695, %v924_v16  ;;  %v2288_v17 = vadd.f32 %v824_v48, %v2257_v59  ;;  %1598 = vpow2.f32 %v959_v43 }
 0x236   :  { %v828_v55 = vpop.f32.mrf.mxu0  ;;  %vm893_vm11 = vcmp.gt.f32.partialorder %v2284_v42, 0.0 }
 0x237   :  { %v2291_v7 = vadd.f32 %v828_v55, %v2254_v53  ;;  %v963_v12 = vmul.f32 1.442695, %v925_v52  ;;  %v926_v61 = vmin.f32 %v2288_v17, 0.0  ;;  %1600 = vpow2.f32 %v961_v54 }
 0x238   :  { %v830_v62 = vpop.f32.mrf.mxu0  ;;  %vm894_vm12 = vcmp.gt.f32.partialorder %v2288_v17, 0.0 }
 0x239   :  { %v927_v63 = vmin.f32 %v2291_v7, 0.0  ;;  %v2296_v1 = vadd.f32 %v830_v62, %v2257_v59  ;;  %v965_v18 = vmul.f32 1.442695, %v926_v61  ;;  %1602 = vpow2.f32 %v963_v12 }
 0x23a   :  { %v1591_v8 = vpop.eup %1590  ;;  %v832_v2 = vpop.f32.mrf.mxu0  ;;  %vm895_vm13 = vcmp.gt.f32.partialorder %v2291_v7, 0.0 }
 0x23b   :  { %v928_v57 = vmin.f32 %v2296_v1, 0.0  ;;  %v2303_v6 = vadd.f32 %v832_v2, %v2254_v53  ;;  %1604 = vpow2.f32 %v965_v18  ;;  %v967_v44 = vmul.f32 1.442695, %v927_v63 }
 0x23c   :  { %v1593_v58 = vpop.eup %1592  ;;  %v834_v9 = vpop.f32.mrf.mxu0  ;;  %v1405_v15 = vadd.f32 -1.0, %v1591_v8  ;;  %vm896_vm14 = vcmp.gt.f32.partialorder %v2296_v1, 0.0 }
 0x23d   :  { %v838_v10 = vpop.f32.mrf.mxu1  ;;  %v929_v14 = vmin.f32 %v2303_v6, 0.0  ;;  %v969_v38 = vmul.f32 1.442695, %v928_v57  ;;  %v2313_v20 = vadd.f32 %v834_v9, %v2257_v59  ;;  %v1406_v27 = vadd.f32 -1.0, %v1593_v58 }
 0x23e   :  { %v2316_v60 = vadd.f32 %v838_v10, %v2254_v53  ;;  %v1595_v19 = vpop.eup %1594  ;;  %1606 = vpow2.f32 %v967_v44  ;;  %v1047_v28 = vsel %vm887_vm5, %v2260_v22, %v1405_v15  ;;  %vm897_vm15 = vcmp.gt.f32.partialorder %v2303_v6, 0.0 }
 0x23f   :  { %v840_v39 = vpop.f32.mrf.mxu1  ;;  %v971_v47 = vmul.f32 1.442695, %v929_v14  ;;  %v930_v21 = vmin.f32 %v2313_v20, 0.0  ;;  %1608 = vpow2.f32 %v969_v38  ;;  %v1048_v29 = vsel %vm888_vm6, %v2264_v5, %v1406_v27 }
 0x240   :  { %v2321_v49 = vadd.f32 %v840_v39, %v2257_v59  ;;  %v931_v23 = vmin.f32 %v2316_v60, 0.0  ;;  %v1597_v25 = vpop.eup %1596  ;;  %v1407_v4 = vadd.f32 -1.0, %v1595_v19  ;;  %v1090_v36 = vmul.f32 %v2306_v11, %v1047_v28 }
 0x241   :  { %v842_v56 = vpop.f32.mrf.mxu1  ;;  %v973_v50 = vmul.f32 1.442695, %v930_v21  ;;  %1610 = vpow2.f32 %v971_v47  ;;  %v1091_v22 = vmul.f32 %v2309_v13, %v1048_v29  ;;  %v1408_v51 = vadd.f32 -1.0, %v1597_v25 }
 0x242   :  { %v932_v26 = vmin.f32 %v2321_v49, 0.0  ;;  %v2330_v32 = vadd.f32 %v842_v56, %v2254_v53  ;;  %v975_v34 = vmul.f32 1.442695, %v931_v23  ;;  %v1599_v0 = vpop.eup %1598  ;;  %v1049_v43 = vsel %vm889_vm7, %v2268_v30, %v1407_v4 }
 0x243   :  { %v844_v24 = vpop.f32.mrf.mxu1  ;;  %1612 = vpow2.f32 %v973_v50  ;;  %v1122_v48 = vadd.f32 %v1091_v22, %v1090_v36  ;;  %v1050_v55 = vsel %vm890_vm8, %v2272_v33, %v1408_v51  ;;  %v1092_v3 = vmul.f32 %v2306_v11, %v1049_v43 }
 0x244   :  { %v933_v37 = vmin.f32 %v2330_v32, 0.0  ;;  %v2338_v35 = vadd.f32 %v844_v24, %v2257_v59  ;;  %v977_v5 = vmul.f32 1.442695, %v932_v26  ;;  %v1601_v12 = vpop.eup %1600  ;;  %1614 = vpow2.f32 %v975_v34 }
 0x245   :  { %v848_v40 = vpop.f32.mrf.mxu1  ;;  %1123 = vadd.xlane.f32.xlu0 %v1122_v48  ;;  %v1093_v8 = vmul.f32 %v2309_v13, %v1050_v55  ;;  %v1409_v2 = vadd.f32 -1.0, %v1599_v0  ;;  %v1410_v15 = vadd.f32 -1.0, %v1601_v12  ;;  %vm898_vm0 = vcmp.gt.f32.partialorder %v2313_v20, 0.0 }
 0x246   :  { %v934_v16 = vmin.f32 %v2338_v35, 0.0  ;;  %v2349_v52 = vadd.f32 %v848_v40, %v2254_v53  ;;  %v979_v61 = vmul.f32 1.442695, %v933_v37  ;;  %v1603_v57 = vpop.eup %1602  ;;  %1616 = vpow2.f32 %v977_v5 }
 0x247   :  { %v850_v54 = vpop.f32.mrf.mxu1  ;;  %v1125_v44 = vadd.f32 %v1093_v8, %v1092_v3  ;;  %v1051_v38 = vsel %vm891_vm9, %v2275_v31, %v1409_v2  ;;  %v1052_v47 = vsel %vm892_vm10, %v2280_v41, %v1410_v15  ;;  %v1411_v23 = vadd.f32 -1.0, %v1603_v57 }
 0x248   :  { %v981_v62 = vmul.f32 1.442695, %v934_v16  ;;  %v2355_v63 = vadd.f32 %v850_v54, %v2257_v59  ;;  %v935_v30 = vmin.f32 %v2349_v52, 0.0  ;;  %v1605_v9 = vpop.eup %1604  ;;  %1618 = vpow2.f32 %v979_v61 }
 0x249   :  { %v852_v18 = vpop.f32.mrf.mxu1  ;;  %1126 = vadd.xlane.f32.xlu1 %v1125_v44  ;;  %v1094_v25 = vmul.f32 %v2306_v11, %v1051_v38  ;;  %v1095_v28 = vmul.f32 %v2309_v13, %v1052_v47  ;;  %v1412_v29 = vadd.f32 -1.0, %v1605_v9  ;;  %v1053_v41 = vsel %vm893_vm11, %v2284_v42, %v1411_v23 }
 0x24a   :  { %v936_v33 = vmin.f32 %v2355_v63, 0.0  ;;  %v2363_v58 = vadd.f32 %v852_v18, %v2254_v53  ;;  %v983_v10 = vmul.f32 1.442695, %v935_v30  ;;  %1620 = vpow2.f32 %v981_v62 }
 0x24b   :  { %v854_v14 = vpop.f32.mrf.mxu1  ;;  %v1607_v26 = vpop.eup %1606  ;;  %v1128_v22 = vadd.f32 %v1095_v28, %v1094_v25  ;;  %v1054_v51 = vsel %vm894_vm12, %v2288_v17, %v1412_v29  ;;  %v1096_v5 = vmul.f32 %v2306_v11, %v1053_v41  ;;  %vm899_vm2 = vcmp.gt.f32.partialorder %v2316_v60, 0.0 }
 0x24c   :  { %v985_v39 = vmul.f32 1.442695, %v936_v33  ;;  %v937_v27 = vmin.f32 %v2363_v58, 0.0  ;;  %v2371_v19 = vadd.f32 %v854_v14, %v2257_v59  ;;  %1622 = vpow2.f32 %v983_v10  ;;  %v1609_v4 = vpop.eup %1608 }
 0x24d   :  { %v858_v21 = vpop.f32.mrf.mxu1  ;;  %v1097_v16 = vmul.f32 %v2309_v13, %v1054_v51  ;;  %1129 = vadd.xlane.f32.xlu0 %v1128_v22  ;;  %v1413_v55 = vadd.f32 -1.0, %v1607_v26  ;;  %v1414_v12 = vadd.f32 -1.0, %v1609_v4  ;;  %vm900_vm3 = vcmp.gt.f32.partialorder %v2321_v49, 0.0 }
 0x24e   :  { %v987_v31 = vmul.f32 1.442695, %v937_v27  ;;  %v938_v56 = vmin.f32 %v2371_v19, 0.0  ;;  %v2381_v50 = vadd.f32 %v858_v21, %v2254_v53  ;;  %1624 = vpow2.f32 %v985_v39  ;;  %v1611_v36 = vpop.eup %1610 }
 0x24f   :  { %v860_v24 = vpop.f32.mrf.mxu1  ;;  %v1131_v30 = vadd.f32 %v1097_v16, %v1096_v5  ;;  %v1415_v3 = vadd.f32 -1.0, %v1611_v36  ;;  %v1055_v2 = vsel %vm895_vm13, %v2291_v7, %v1413_v55  ;;  %v1056_v9 = vsel %vm896_vm14, %v2296_v1, %v1414_v12 }
 0x250   :  { %v989_v34 = vmul.f32 1.442695, %v938_v56  ;;  %v2388_v37 = vadd.f32 %v860_v24, %v2257_v59  ;;  %1626 = vpow2.f32 %v987_v31  ;;  %v939_v40 = vmin.f32 %v2381_v50, 0.0  ;;  %v1613_v61 = vpop.eup %1612 }
 0x251   :  { %v862_v0 = vpop.f32.mrf.mxu1  ;;  %v1615_v8 = vpop.eup %1614  ;;  %1132 = vadd.xlane.f32.xlu0 %v1131_v30  ;;  %v1098_v14 = vmul.f32 %v2306_v11, %v1055_v2  ;;  %v1099_v15 = vmul.f32 %v2309_v13, %v1056_v9  ;;  %v1416_v47 = vadd.f32 -1.0, %v1613_v61  ;;  %v1057_v1 = vsel %vm897_vm15, %v2303_v6, %v1415_v3 }
 0x252   :  { %1628 = vpow2.f32 %v989_v34  ;;  %v940_v42 = vmin.f32 %v2388_v37, 0.0  ;;  %v991_v43 = vmul.f32 1.442695, %v939_v40  ;;  %v2398_v48 = vadd.f32 %v862_v0, %v2254_v53 }
 0x253   :  { %v864_v54 = vpop.f32.mrf.mxu1  ;;  %v1617_v10 = vpop.eup %1616  ;;  %v1134_v23 = vadd.f32 %v1099_v15, %v1098_v14  ;;  %vm901_vm4 = vcmp.gt.f32.partialorder %v2330_v32, 0.0  ;;  %v1058_v28 = vsel %vm898_vm0, %v2313_v20, %v1416_v47  ;;  %v1100_v29 = vmul.f32 %v2306_v11, %v1057_v1 }
 0x254   :  { %v993_v62 = vmul.f32 1.442695, %v940_v42  ;;  %v2401_v17 = vadd.f32 %v864_v54, %v2257_v59  ;;  %1630 = vpow2.f32 %v991_v43  ;;  %v941_v18 = vmin.f32 %v2398_v48, 0.0 }
 0x255   :  { %v868_v57 = vpop.f32.mrf.mxu1  ;;  %v1619_v21 = vpop.eup %1618  ;;  %1135 = vadd.xlane.f32.xlu1 %v1134_v23  ;;  %v1101_v41 = vmul.f32 %v2309_v13, %v1058_v28  ;;  %v1417_v40 = vadd.f32 -1.0, %v1615_v8  ;;  %v1418_v51 = vadd.f32 -1.0, %v1617_v10  ;;  %vm902_vm5 = vcmp.gt.f32.partialorder %v2338_v35, 0.0 }
 0x256   :  { %1632 = vpow2.f32 %v993_v62  ;;  %v942_v33 = vmin.f32 %v2401_v17, 0.0  ;;  %v995_v44 = vmul.f32 1.442695, %v941_v18  ;;  %v2416_v38 = vadd.f32 %v868_v57, %v2254_v53 }
 0x257   :  { %v870_v7 = vpop.f32.mrf.mxu1  ;;  %v1621_v25 = vpop.eup %1620  ;;  %v1137_v20 = vadd.f32 %v1101_v41, %v1100_v29  ;;  %vm903_vm6 = vcmp.gt.f32.partialorder %v2349_v52, 0.0  ;;  %v1059_v54 = vsel %vm899_vm2, %v2316_v60, %v1417_v40  ;;  %v1060_v61 = vsel %vm900_vm3, %v2321_v49, %v1418_v51 }
 0x258   :  { %v997_v39 = vmul.f32 1.442695, %v942_v33  ;;  %v2419_v27 = vadd.f32 %v870_v7, %v2257_v59  ;;  %1634 = vpow2.f32 %v995_v44  ;;  %v943_v31 = vmin.f32 %v2416_v38, 0.0 }
 0x259   :  { %v872_v56 = vpop.f32.mrf.mxu1  ;;  %v1623_v24 = vpop.eup %1622  ;;  %1138 = vadd.xlane.f32.xlu0 %v1137_v20  ;;  %v1102_v62 = vmul.f32 %v2306_v11, %v1059_v54  ;;  %vm904_vm7 = vcmp.gt.f32.partialorder %v2355_v63, 0.0  ;;  %vm905_vm8 = vcmp.gt.f32.partialorder %v2363_v58, 0.0  ;;  %v1103_v60 = vmul.f32 %v2309_v13, %v1060_v61 }
 0x25a   :  { %1636 = vpow2.f32 %v997_v39  ;;  %v944_v26 = vmin.f32 %v2419_v27, 0.0  ;;  %v999_v6 = vmul.f32 1.442695, %v943_v31  ;;  %v2434_v4 = vadd.f32 %v872_v56, %v2254_v53 }
 0x25b   :  { %v874_v34 = vpop.f32.mrf.mxu1  ;;  %v1625_v0 = vpop.eup %1624  ;;  %v1419_v2 = vadd.f32 -1.0, %v1619_v21  ;;  %vm906_vm9 = vcmp.gt.f32.partialorder %v2371_v19, 0.0  ;;  %v1420_v57 = vadd.f32 -1.0, %v1621_v25  ;;  %vm907_vm10 = vcmp.gt.f32.partialorder %v2381_v50, 0.0 }
 0x25c   :  { %v1001_v36 = vmul.f32 1.442695, %v944_v26  ;;  %v2437_v22 = vadd.f32 %v874_v34, %v2257_v59  ;;  %1638 = vpow2.f32 %v999_v6  ;;  %v945_v42 = vmin.f32 %v2434_v4, 0.0 }
 0x25d   :  { %v878_v5 = vpop.f32.mrf.mxu1  ;;  %v1627_v16 = vpop.eup %1626  ;;  %vm908_vm11 = vcmp.gt.f32.partialorder %v2388_v37, 0.0  ;;  %v1140_v10 = vadd.f32 %v1103_v60, %v1102_v62  ;;  %v1061_v7 = vsel %vm901_vm4, %v2330_v32, %v1419_v2  ;;  %v1062_v39 = vsel %vm902_vm5, %v2338_v35, %v1420_v57 }
 0x25e   :  { %1640 = vpow2.f32 %v1001_v36  ;;  %v946_v43 = vmin.f32 %v2437_v22, 0.0  ;;  %v1003_v12 = vmul.f32 1.442695, %v945_v42  ;;  %v2451_v30 = vadd.f32 %v878_v5, %v2254_v53 }
 0x25f   :  { %v1629_v55 = vpop.eup %1628  ;;  %v880_v3 = vpop.f32.mrf.mxu1  ;;  %vm909_vm12 = vcmp.gt.f32.partialorder %v2398_v48, 0.0  ;;  %1141 = vadd.xlane.f32.xlu1 %v1140_v10  ;;  %v1104_v23 = vmul.f32 %v2306_v11, %v1061_v7  ;;  %v1105_v31 = vmul.f32 %v2309_v13, %v1062_v39  ;;  %vm910_vm13 = vcmp.gt.f32.partialorder %v2401_v17, 0.0 }
 0x260   :  { %v1005_v8 = vmul.f32 1.442695, %v946_v43  ;;  %v2457_v18 = vadd.f32 %v880_v3, %v2257_v59  ;;  %1642 = vpow2.f32 %v1003_v12  ;;  %v947_v49 = vmin.f32 %v2451_v30, 0.0 }
 0x261   :  { %v882_v33 = vpop.f32.mrf.mxu1  ;;  %v1631_v9 = vpop.eup %1630  ;;  %v1421_v35 = vadd.f32 -1.0, %v1623_v24  ;;  %vm911_vm14 = vcmp.gt.f32.partialorder %v2416_v38, 0.0  ;;  %v1143_v25 = vadd.f32 %v1105_v31, %v1104_v23  ;;  %v1422_v29 = vadd.f32 -1.0, %v1625_v0 }
 0x262   :  { %1644 = vpow2.f32 %v1005_v8  ;;  %v948_v44 = vmin.f32 %v2457_v18, 0.0  ;;  %v1007_v15 = vmul.f32 1.442695, %v947_v49  ;;  %v2471_v47 = vadd.f32 %v882_v33, %v2254_v53 }
 0x263   :  { %v1633_v14 = vpop.eup %1632  ;;  %v884_v1 = vpop.f32.mrf.mxu1  ;;  %v1423_v41 = vadd.f32 -1.0, %v1627_v16  ;;  %1144 = vadd.xlane.f32.xlu0 %v1143_v25  ;;  %v1424_v24 = vadd.f32 -1.0, %v1629_v55  ;;  %v1425_v40 = vadd.f32 -1.0, %v1631_v9  ;;  %v1064_v51 = vsel %vm904_vm7, %v2355_v63, %v1422_v29 }
 0x264   :  { %v1009_v21 = vmul.f32 1.442695, %v948_v44  ;;  %v2477_v56 = vadd.f32 %v884_v1, %v2257_v59  ;;  %1646 = vpow2.f32 %v1007_v15  ;;  %v949_v32 = vmin.f32 %v2471_v47, 0.0 }
 0x265   :  { %v1635_v53 = vpop.eup %1634  ;;  %v1063_v59 = vsel %vm903_vm6, %v2349_v52, %v1421_v35  ;;  %v1065_v0 = vsel %vm905_vm8, %v2363_v58, %v1423_v41  ;;  %v1426_v20 = vadd.f32 -1.0, %v1633_v14  ;;  %v1107_v52 = vmul.f32 %v2309_v13, %v1064_v51 }
 0x266   :  { %1648 = vpow2.f32 %v1009_v21  ;;  %v950_v26 = vmin.f32 %v2477_v56, 0.0  ;;  %v1011_v6 = vmul.f32 1.442695, %v949_v32  ;;  %v1106_v36 = vmul.f32 %v2306_v11, %v1063_v59 }
 0x267   :  { %v1637_v28 = vpop.eup %1636  ;;  %v1066_v5 = vsel %vm906_vm9, %v2371_v19, %v1424_v24  ;;  %v1108_v16 = vmul.f32 %v2306_v11, %v1065_v0  ;;  %v1067_v63 = vsel %vm907_vm10, %v2381_v50, %v1425_v40  ;;  %v1068_v58 = vsel %vm908_vm11, %v2388_v37, %v1426_v20 }
 0x268   :  { %v1013_v34 = vmul.f32 1.442695, %v950_v26  ;;  %1650 = vpow2.f32 %v1011_v6  ;;  %v1109_v54 = vmul.f32 %v2309_v13, %v1066_v5  ;;  %v1427_v55 = vadd.f32 -1.0, %v1635_v53 }
 0x269   :  { %v1639_v42 = vpop.eup %1638  ;;  %v1146_v12 = vadd.f32 %v1107_v52, %v1106_v36  ;;  %v1110_v61 = vmul.f32 %v2306_v11, %v1067_v63  ;;  %v1111_v62 = vmul.f32 %v2309_v13, %v1068_v58  ;;  %v1428_v19 = vadd.f32 -1.0, %v1637_v28 }
 0x26a   :  { %1652 = vpow2.f32 %v1013_v34  ;;  %v1149_v3 = vadd.f32 %v1109_v54, %v1108_v16  ;;  %v1069_v8 = vsel %vm909_vm12, %v2398_v48, %v1427_v55  ;;  %v1429_v60 = vadd.f32 -1.0, %v1639_v42 }
 0x26b   :  { %v1641_v43 = vpop.eup %1640  ;;  %vm912_vm15 = vcmp.gt.f32.partialorder %v2419_v27, 0.0  ;;  %1147 = vadd.xlane.f32.xlu1 %v1146_v12  ;;  %v1152_v50 = vadd.f32 %v1111_v62, %v1110_v61  ;;  %v1070_v37 = vsel %vm910_vm13, %v2401_v17, %v1428_v19  ;;  %v1112_v57 = vmul.f32 %v2306_v11, %v1069_v8 }
 0x26c   :  { %v1430_v2 = vadd.f32 -1.0, %v1641_v43  ;;  %1150 = vadd.xlane.f32.xlu0 %v1149_v3  ;;  %v1113_v9 = vmul.f32 %v2309_v13, %v1070_v37  ;;  %v1071_v48 = vsel %vm911_vm14, %v2416_v38, %v1429_v60  ;;  %vm913_vm0 = vcmp.gt.f32.partialorder %v2434_v4, 0.0 }
 0x26d   :  { %v1643_v49 = vpop.eup %1642  ;;  %v1114_v14 = vmul.f32 %v2306_v11, %v1071_v48  ;;  %vm914_vm2 = vcmp.gt.f32.partialorder %v2437_v22, 0.0  ;;  %vm915_vm3 = vcmp.gt.f32.partialorder %v2451_v30, 0.0  ;;  %vm916_vm4 = vcmp.gt.f32.partialorder %v2457_v18, 0.0 }
 0x26e   :  { %v1072_v10 = vsel %vm912_vm15, %v2419_v27, %v1430_v2  ;;  %v1431_v44 = vadd.f32 -1.0, %v1643_v49  ;;  %v1155_v7 = vadd.f32 %v1113_v9, %v1112_v57  ;;  %vm917_vm5 = vcmp.gt.f32.partialorder %v2471_v47, 0.0 }
 0x26f   :  { %v1645_v33 = vpop.eup %1644  ;;  %v1115_v15 = vmul.f32 %v2309_v13, %v1072_v10  ;;  %1153 = vadd.xlane.f32.xlu1 %v1152_v50  ;;  %vm918_vm6 = vcmp.gt.f32.partialorder %v2477_v56, 0.0  ;;  %v2541_v42 = vand.u32 127, %v195_v45  ;;  %v2550_v54 = vstv %s2614_s7  ;;  %s1678_s7 = smov [#allocation4]  }
 0x270   :  { %v1432_v17 = vadd.f32 -1.0, %v1645_v33  ;;  %v1073_v39 = vsel %vm913_vm0, %v2434_v4, %v1431_v44  ;;  %1156 = vadd.xlane.f32.xlu0 %v1155_v7  ;;  %vm1214_vm7 = vcmask 130112   ;;  %vm1221_vm8 = vcmask 195712   ;;  %s1321_s27 = sshll.u32 %s1678_s7, 4  ;;  %s1322_s27 = int_to_ptr.vmem [resolvable:$true] %s1321_s27 }
 0x271   :  { %v1647_v1 = vpop.eup %1646  ;;  %v1158_v21 = vadd.f32 %v1115_v15, %v1114_v14  ;;  %v1116_v27 = vmul.f32 %v2306_v11, %v1073_v39  ;;  %v1223_v16 = vadd.s32 4294967272, %v2541_v42  ;;  %v1207_v45 = vsub.s32 %v2541_v42, %v2037_v46  ;;  %s1654_s1 = scalar_lea.vmem %s1322_s27, 16  ;;  %s1658_s28 = scalar_lea.vmem %s1322_s27, 32 }
 0x272   :  { %v1074_v38 = vsel %vm914_vm2, %v2437_v22, %v1432_v17  ;;  %v1433_v32 = vadd.f32 -1.0, %v1647_v1  ;;  %v1236_v58 = vadd.s32 4294967256, %v2541_v42  ;;  %v1243_v12 = vadd.s32 4294967248, %v2541_v42  ;;  %p1655_p0 = scmp.ne.s32.totalorder %s1322_s27, %s1654_s1  ;;  %p1659_p1 = scmp.lt.s32.totalorder %s1322_s27, %s1322_s27 }
 0x273   :  { %v1649_v23 = vpop.eup %1648  ;;  %v1117_v31 = vmul.f32 %v2309_v13, %v1074_v38  ;;  %1159 = vadd.xlane.f32.xlu1 %v1158_v21  ;;  %v1226_v62 = vsub.s32 %v1223_v16, %v2037_v46  ;;  %vm1234_vm9 = vcmask 326912   ;;  %v1250_v19 = vadd.s32 4294967240, %v2541_v42  ;;  %p1660_p2 = scmp.lt.s32.totalorder %s1658_s28, %s1654_s1 }
 0x274   :  { %v1434_v35 = vadd.f32 -1.0, %v1649_v23  ;;  %v1075_v4 = vsel %vm915_vm3, %v2451_v30, %v1433_v32  ;;  %vm1241_vm10 = vcmask 392512   ;;  %v1257_v2 = vadd.s32 4294967232, %v2541_v42 }
 0x275   :  { %v1161_v53 = vadd.f32 %v1117_v31, %v1116_v27  ;;  %v1651_v25 = vpop.eup %1650  ;;  %v1118_v28 = vmul.f32 %v2306_v11, %v1075_v4  ;;  %v1264_v49 = vadd.s32 4294967224, %v2541_v42  ;;  %v1239_v33 = vsub.s32 %v1236_v58, %v2037_v46  ;;  %p1661_p3 = por %p1660_p2, %p1659_p1 }
 0x276   :  { %v1076_v26 = vsel %vm916_vm4, %v2457_v18, %v1434_v35  ;;  %v1435_v29 = vadd.f32 -1.0, %v1651_v25  ;;  %vm1248_vm11 = vcmask 458112   ;;  %v1246_v48 = vsub.s32 %v1243_v12, %v2037_v46 }
 0x277   :  { %v1653_v22 = vpop.eup %1652  ;;  %1162 = vadd.xlane.f32.xlu0 %v1161_v53  ;;  %v1119_v6 = vmul.f32 %v2309_v13, %v1076_v26  ;;  %vm1255_vm12 = vcmask 523712   ;;  %v1271_v10 = vadd.s32 4294967216, %v2541_v42  ;;  %v1253_v15 = vsub.s32 %v1250_v19, %v2037_v46  ;;  %p1662_p4 = pnand %p1661_p3, %p1655_p0 }
 0x278   :  { %v1436_v59 = vadd.f32 -1.0, %v1653_v22  ;;  %v1077_v34 = vsel %vm917_vm5, %v2471_v47, %v1435_v29  ;;  %v1209_v47 = vadd.s32 4294967288, %v2541_v42  ;;  %vm1262_vm13 = vcmask 589312  }
 0x279   :  { %v1164_v41 = vadd.f32 %v1119_v6, %v1118_v28  ;;  %v1120_v18 = vmul.f32 %v2306_v11, %v1077_v34  ;;  %v1278_v7 = vadd.s32 4294967208, %v2541_v42  ;;  %v1260_v21 = vsub.s32 %v1257_v2, %v2037_v46 }
 0x27a   :  { %v1078_v30 = vsel %vm918_vm6, %v2477_v56, %v1436_v59  ;;  %v1216_v56 = vadd.s32 4294967280, %v2541_v42  ;;  %v1212_v63 = vsub.s32 %v1209_v47, %v2037_v46  ;;  %v1267_v38 = vsub.s32 %v1264_v49, %v2037_v46 }
 0x27b   :  { %1165 = vadd.xlane.f32.xlu1 %v1164_v41  ;;  %v1121_v36 = vmul.f32 %v2309_v13, %v1078_v30  ;;  %v1229_v13 = vadd.s32 4294967264, %v2541_v42  ;;  %v1285_v35 = vadd.s32 4294967200, %v2541_v42  ;;  %v1274_v25 = vsub.s32 %v1271_v10, %v2037_v46 }
 0x27c   :  { %v1219_v55 = vsub.s32 %v1216_v56, %v2037_v46  ;;  %v1292_v26 = vadd.s32 4294967192, %v2541_v42  ;;  %v1281_v29 = vsub.s32 %v1278_v7, %v2037_v46  ;;  %vm1276_vm14 = vcmask 720512  }
 0x27d   :  { %v1167_v24 = vadd.f32 %v1121_v36, %v1120_v18  ;;  %v1232_v60 = vsub.s32 %v1229_v13, %v2037_v46  ;;  %v1299_v36 = vadd.s32 4294967184, %v2541_v42  ;;  %v1306_v13 = vadd.s32 4294967176, %v2541_v42 }
 0x27e   :  { %v1295_v47 = vsub.s32 %v1292_v26, %v2037_v46  ;;  %vm1283_vm15 = vcmask 786112   ;;  %vm1290_vm0 = vcmask 851712   ;;  %vm1297_vm2 = vcmask 917312  }
 0x27f   :  { %1168 = vadd.xlane.f32.xlu0 %v1167_v24  ;;  %vm1304_vm3 = vcmask 982912   ;;  %vm1311_vm4 = vcmask 1048512  }
 0x2ce   :  { %v1124_v40 = vpop.xlane.xlu0 %1123 }
 0x2cf   :  { %v1171_v37 = vadd.f32 %v2550_v54, %v1124_v40 }
 0x2d1   :  { %v1208_v27 = vrot.slane %v1171_v37, %v1207_v45 }
 0x2d2   :  { %v1127_v0 = vpop.xlane.xlu1 %1126 }
 0x2d3   :  { %v1172_v61 = vadd.f32 %v2550_v54, %v1127_v0  ;;  %v1288_v0 = vsub.s32 %v1285_v35, %v2037_v46 }
 0x2d5   :  { %v1213_v44 = vrot.slane %v1172_v61, %v1212_v63  ;;  %v1302_v63 = vsub.s32 %v1299_v36, %v2037_v46 }
 0x2d6   :  { %v1130_v51 = vpop.xlane.xlu0 %1129 }
 0x2d7   :  { %v1173_v8 = vadd.f32 %v2550_v54, %v1130_v51  ;;  %v1215_v22 = vsel %vm1214_vm7, %v1213_v44, %v1208_v27 }
 0x2d9   :  { %v1220_v39 = vrot.slane %v1173_v8, %v1219_v55  ;;  %v1309_v8 = vsub.s32 %v1306_v13, %v2037_v46 }
 0x2da   :  { %v1133_v20 = vpop.xlane.xlu0 %1132 }
 0x2db   :  { %v1174_v57 = vadd.f32 %v2550_v54, %v1133_v20  ;;  %v1222_v41 = vsel %vm1221_vm8, %v1220_v39, %v1215_v22 }
 0x2dd   :  { %v1227_v31 = vrot.slane %v1174_v57, %v1226_v62 }
 0x2de   :  { %v1136_v52 = vpop.xlane.xlu1 %1135 }
 0x2df   :  { %v1175_v9 = vadd.f32 %v2550_v54, %v1136_v52  ;;  %v1228_v24 = vsel %vm145_vm1, %v1227_v31, %v1222_v41  ;;  %vm1269_vm1 = vcmask 654912  }
 0x2e1   :  { %v1233_v53 = vrot.slane %v1175_v9, %v1232_v60 }
 0x2e2   :  { %v1139_v5 = vpop.xlane.xlu0 %1138 }
 0x2e3   :  { %v1176_v14 = vadd.f32 %v2550_v54, %v1139_v5  ;;  %v1235_v20 = vsel %vm1234_vm9, %v1233_v53, %v1228_v24 }
 0x2e5   :  { %v1240_v28 = vrot.slane %v1176_v14, %v1239_v33 }
 0x2e7   :  { %v1242_v56 = vsel %vm1241_vm10, %v1240_v28, %v1235_v20 }
 0x2e8   :  { %v1142_v11 = vpop.xlane.xlu1 %1141 }
 0x2e9   :  { %v1177_v1 = vadd.f32 %v2550_v54, %v1142_v11 }
 0x2eb   :  { %v1247_v34 = vrot.slane %v1177_v1, %v1246_v48 }
 0x2ec   :  { %v1145_v43 = vpop.xlane.xlu0 %1144 }
 0x2ed   :  { %v1178_v32 = vadd.f32 %v2550_v54, %v1145_v43  ;;  %v1249_v43 = vsel %vm1248_vm11, %v1247_v34, %v1242_v56 }
 0x2ef   :  { %v1254_v40 = vrot.slane %v1178_v32, %v1253_v15 }
 0x2f1   :  { %v1256_v55 = vsel %vm1255_vm12, %v1254_v40, %v1249_v43 }
 0x2f4   :  { %v1148_v3 = vpop.xlane.xlu1 %1147 }
 0x2f5   :  { %v1151_v50 = vpop.xlane.xlu0 %1150  ;;  %v1179_v4 = vadd.f32 %v2550_v54, %v1148_v3 }
 0x2f6   :  { %v1180_v6 = vadd.f32 %v2550_v54, %v1151_v50 }
 0x2f7   :  { %v1261_v52 = vrot.slane %v1179_v4, %v1260_v21 }
 0x2f8   :  { %v1154_v17 = vpop.xlane.xlu1 %1153  ;;  %v1268_v16 = vrot.slane %v1180_v6, %v1267_v38 }
 0x2f9   :  { %v1157_v23 = vpop.xlane.xlu0 %1156  ;;  %v1181_v30 = vadd.f32 %v2550_v54, %v1154_v17  ;;  %v1263_v62 = vsel %vm1262_vm13, %v1261_v52, %v1256_v55 }
 0x2fa   :  { %v1182_v51 = vadd.f32 %v2550_v54, %v1157_v23  ;;  %v1270_v3 = vsel %vm1269_vm1, %v1268_v16, %v1263_v62 }
 0x2fb   :  { %v1275_v45 = vrot.slane %v1181_v30, %v1274_v25 }
 0x2fc   :  { %v1160_v59 = vpop.xlane.xlu1 %1159  ;;  %v1282_v12 = vrot.slane %v1182_v51, %v1281_v29 }
 0x2fd   :  { %v1183_v5 = vadd.f32 %v2550_v54, %v1160_v59  ;;  %v1277_v60 = vsel %vm1276_vm14, %v1275_v45, %v1270_v3 }
 0x2fe   :  { %v1284_v50 = vsel %vm1283_vm15, %v1282_v12, %v1277_v60 }
 0x2ff   :  { %v1289_v19 = vrot.slane %v1183_v5, %v1288_v0 }
 0x300   :  { %v1163_v18 = vpop.xlane.xlu0 %1162 }
 0x301   :  { %v1184_v11 = vadd.f32 %v2550_v54, %v1163_v18  ;;  %v1291_v57 = vsel %vm1290_vm0, %v1289_v19, %v1284_v50 }
 0x303   :  { %v1296_v42 = vrot.slane %v1184_v11, %v1295_v47 }
 0x304   :  { %v1166_v58 = vpop.xlane.xlu1 %1165 }
 0x305   :  { %v1185_v61 = vadd.f32 %v2550_v54, %v1166_v58  ;;  %v1298_v9 = vsel %vm1297_vm2, %v1296_v42, %v1291_v57 }
 0x307   :  { %v1303_v2 = vrot.slane %v1185_v61, %v1302_v63 }
 0x308   :  { %v1169_v49 = vpop.xlane.xlu0 %1168 }
 0x309   :  { %v1186_v37 = vadd.f32 %v2550_v54, %v1169_v49  ;;  %v1305_v48 = vsel %vm1304_vm3, %v1303_v2, %v1298_v9 }
 0x30b   :  { %v1310_v33 = vrot.slane %v1186_v37, %v1309_v8 }
 0x30d   :  { %v1312_v10 = vsel %vm1311_vm4, %v1310_v33, %v1305_v48 }
 0x30e   :  { %1314 = vst [vmem:[#allocation4] sm:$0x1] %v1312_v10 }
 0x30f   :  { %1665 = shalt.err (!%p1662_p4)
}
 0x310   :  { %1324 = dma.vmem_to_hbm [thread:$0]  %s1322_s27, 16, %s2615_s8, [#allocation5]  }
 0x311   :  { %1674 = dma.done.wait [#allocation5], 16  }
 0x312   :  { %1675 = vsyncadd [#allocation5], 4294967280 }
 0x313   :  { %1328 = vsyncpa [#allocation5], 1 }

</bundles_post_ra>
